<compile_context>
chip_gen: v7x
topology: tpu7x:2x2x1
jax: 0.10.0
libtpu: 0.0.40
codegen_flags: <defaults>
</compile_context>

<pallas_src>
import functools

import jax
import jax.numpy as jnp
import numpy as np
from jax.experimental import pallas as pl
from jax.experimental.pallas import tpu as pltpu


def _round_up(x, m):
    return ((x + m - 1) // m) * m


# ----------------------------------------------------------------------------
# Fused PointEmbed kernel
# ----------------------------------------------------------------------------

def _point_embed_kernel(x_ref, sel_ref, phase_ref, w_ref, b_ref, o_ref, *, hidden):
    x = x_ref[...]                                        # (tm, 8) f32: xyz + 0-pad

    # One small K=8 MXU pass builds every pre-activation column at once:
    #   cols [0, hidden/2)      : x|y|z * freqs   -> sin half
    #   cols [hidden/2, hidden) : x|y|z * freqs   -> cos half (phase-shifted)
    #   cols [hidden, hidden+3) : raw x, y, z passthrough
    #   cols [hidden+3, Kp)     : zero padding
    proj = jnp.dot(x, sel_ref[...], preferred_element_type=jnp.float32)   # (tm, Kp)

    # Single transcendental over the whole Kp-wide tensor; cos(t) = sin(t + pi/2).
    trig = jnp.sin(proj + phase_ref[...])                 # (tm, Kp) f32
    lane = jax.lax.broadcasted_iota(jnp.int32, proj.shape, 1)
    feats = jnp.where(lane < hidden, trig, proj)          # raw xyz / zero-pad untouched

    # Whole nn.Linear as one K=Kp MXU contraction (f32 accumulate).
    acc = jnp.dot(feats.astype(w_ref.dtype), w_ref[...],
                  preferred_element_type=jnp.float32)     # (tm, D) f32

    o_ref[...] = (acc + b_ref[...]).astype(o_ref.dtype)


def point_embed(points, freqs, w, b, *, block_rows=1024,
                mxu_dtype=jnp.bfloat16, out_dtype=jnp.float32):
    """Fused PointEmbed.forward.

    points: (B, N, 3) float32
    freqs : (hidden//6,) float32     -- the 2**k * pi frequencies
    w     : (hidden + 3, D) float32  -- nn.Linear weight (input-major)
    b     : (D,) float32             -- nn.Linear bias
    returns (B, N, D) out_dtype
    """
    B, N, three = points.shape
    assert three == 3
    k6 = freqs.shape[-1]
    hidden = 6 * k6
    fan_in, D = w.shape
    assert fan_in == hidden + 3

    M = B * N
    Kp = _round_up(hidden + 3, 64)      # padded feature width (64 for hidden=48)

    # xyz padded to 8 lanes so the projection matmul's K dim is sublane aligned.
    x = jnp.zeros((M, 8), jnp.float32).at[:, :3].set(
        points.reshape(M, 3).astype(jnp.float32))

    # Big row tile (per-grid-step overhead ~0.35 us dominates small tiles),
    # multiple of 16 (bf16 sublane packing), >= 2 grid steps for v7x megacore.
    tm = max(16, min(block_rows, _round_up(pl.cdiv(M, 2), 16)))
    m_pad = _round_up(M, tm)
    if m_pad != M:
        x = jnp.pad(x, ((0, m_pad - M), (0, 0)))

    # Selection matrix: block-diagonal frequencies, duplicated for the sin and
    # cos halves, identity rows for the raw xyz passthrough, zeros elsewhere.
    z = jnp.zeros((k6,), jnp.float32)
    basis = jnp.stack([jnp.concatenate([freqs, z, z]),
                       jnp.concatenate([z, freqs, z]),
                       jnp.concatenate([z, z, freqs])], axis=0)   # (3, hidden//2)
    sel = jnp.zeros((8, Kp), jnp.float32)
    sel = sel.at[:3, :hidden // 2].set(basis)
    sel = sel.at[:3, hidden // 2:hidden].set(basis)
    sel = sel.at[:3, hidden:hidden + 3].set(jnp.eye(3, dtype=jnp.float32))
    phase = jnp.zeros((1, Kp), jnp.float32).at[0, hidden // 2:hidden].set(jnp.pi / 2)

    # MLP weight zero-padded to (Kp, D): raw-xyz rows are folded in so the whole
    # Linear is a single MXU pass; rows >= hidden+3 are zero.
    w_pad = jnp.zeros((Kp, D), mxu_dtype).at[:hidden + 3].set(w.astype(mxu_dtype))
    b2 = b.reshape(1, D).astype(jnp.float32)

    kernel = functools.partial(_point_embed_kernel, hidden=hidden)
    out = pl.pallas_call(
        kernel,
        out_shape=jax.ShapeDtypeStruct((m_pad, D), out_dtype),
        grid=(m_pad // tm,),
        in_specs=[
            pl.BlockSpec((tm, 8), lambda i: (i, 0)),
            pl.BlockSpec((8, Kp), lambda i: (0, 0)),
            pl.BlockSpec((1, Kp), lambda i: (0, 0)),
            pl.BlockSpec((Kp, D), lambda i: (0, 0)),
            pl.BlockSpec((1, D), lambda i: (0, 0)),
        ],
        out_specs=pl.BlockSpec((tm, D), lambda i: (i, 0)),
        compiler_params=pltpu.CompilerParams(dimension_semantics=("parallel",)),
    )(x, sel, phase, w_pad, b2)

    return out[:M].reshape(B, N, D)


# ----------------------------------------------------------------------------
# Pure-JAX reference (mirrors the PyTorch module exactly, full f32)
# ----------------------------------------------------------------------------

def point_embed_reference(points, freqs, w, b):
    k6 = freqs.shape[-1]
    z = jnp.zeros((k6,), jnp.float32)
    basis = jnp.stack([jnp.concatenate([freqs, z, z]),
                       jnp.concatenate([z, freqs, z]),
                       jnp.concatenate([z, z, freqs])], axis=0)      # (3, 3*k6)
    proj = jnp.einsum('bnd,de->bne', points, basis)                  # (B, N, 3*k6)
    emb = jnp.concatenate([jnp.sin(proj), jnp.cos(proj), points], axis=-1)
    return jnp.dot(emb, w) + b


# ----------------------------------------------------------------------------
# Main
# ----------------------------------------------------------------------------

if __name__ == "__main__":
    hidden_dim, dim = 48, 128          # PyTorch defaults
    B, N = 2, 64

    key = jax.random.PRNGKey(0)
    k_pts, k_w, k_b = jax.random.split(key, 3)

    k6 = hidden_dim // 6
    freqs = (2.0 ** jnp.arange(k6, dtype=jnp.float32)) * jnp.pi     # (8,)

    fan_in = hidden_dim + 3
    bound = 1.0 / (fan_in ** 0.5)      # nn.Linear default init range
    w = jax.random.uniform(k_w, (fan_in, dim), jnp.float32, -bound, bound)
    b = jax.random.uniform(k_b, (dim,), jnp.float32, -bound, bound)

    points = jax.random.normal(k_pts, (B, N, 3), jnp.float32)

    fwd = jax.jit(point_embed)
    out = fwd(points, freqs, w, b)
    jax.block_until_ready(out)

    assert out.shape == (B, N, dim), out.shape
    assert bool(jnp.all(jnp.isfinite(out)))

    # Tolerance covers the bf16 MXU operands of the (tm,Kp)x(Kp,D) contraction;
    # pass mxu_dtype=jnp.float32 for bit-closeness to the PyTorch module.
    ref = point_embed_reference(points, freqs, w, b)
    np.testing.assert_allclose(np.asarray(out), np.asarray(ref),
                               rtol=2e-2, atol=2e-2)

    print("KERNEL_OK")
</pallas_src>

<mosaic_0001>
module attributes {stable_mosaic.version = 11 : i64} {
  func.func @_point_embed_kernel(%arg0: i32, %arg1: memref<64x8xf32, #tpu.memory_space<vmem>>, %arg2: memref<8x64xf32, #tpu.memory_space<vmem>>, %arg3: memref<1x64xf32, #tpu.memory_space<vmem>>, %arg4: memref<64x128xbf16, #tpu.memory_space<vmem>>, %arg5: memref<1x128xf32, #tpu.memory_space<vmem>>, %arg6: memref<64x128xf32, #tpu.memory_space<vmem>>) attributes {dimension_semantics = [#tpu.dimension_semantics<parallel>], iteration_bounds = array<i64: 2>, scalar_prefetch = 0 : i64, scratch_operands = 0 : i64, tpu.core_type = #tpu.core_type<tc>, window_params = [{transform_indices = @transform_0, window_bounds = array<i64: 64, 8>}, {pipeline_mode = #tpu.pipeline_mode<synchronous>, transform_indices = @transform_1, window_bounds = array<i64: 8, 64>}, {pipeline_mode = #tpu.pipeline_mode<synchronous>, transform_indices = @transform_2, window_bounds = array<i64: 1, 64>}, {pipeline_mode = #tpu.pipeline_mode<synchronous>, transform_indices = @transform_3, window_bounds = array<i64: 64, 128>}, {pipeline_mode = #tpu.pipeline_mode<synchronous>, transform_indices = @transform_4, window_bounds = array<i64: 1, 128>}, {transform_indices = @transform_5, window_bounds = array<i64: 64, 128>}]} {
    %c0 = arith.constant 0 : index
    %c0_0 = arith.constant 0 : index
    %0 = vector.load %arg1[%c0, %c0_0] : memref<64x8xf32, #tpu.memory_space<vmem>>, vector<64x8xf32>
    %c0_1 = arith.constant 0 : index
    %c0_2 = arith.constant 0 : index
    %1 = vector.load %arg2[%c0_1, %c0_2] : memref<8x64xf32, #tpu.memory_space<vmem>>, vector<8x64xf32>
    %cst = arith.constant dense<0.000000e+00> : vector<64x64xf32>
    %2 = tpu.matmul %0, %1, %cst {dimension_numbers = #tpu.dot_dimension_numbers<[1], [0], [0], [1], [0, 0, 1, 1], [], []>} : vector<64x8xf32>, vector<8x64xf32>, vector<64x64xf32> -> vector<64x64xf32>
    %c0_3 = arith.constant 0 : index
    %c0_4 = arith.constant 0 : index
    %3 = vector.load %arg3[%c0_3, %c0_4] : memref<1x64xf32, #tpu.memory_space<vmem>>, vector<1x64xf32>
    %4 = vector.broadcast %3 : vector<1x64xf32> to vector<64x64xf32>
    %5 = arith.addf %2, %4 : vector<64x64xf32>
    %6 = math.sin %5 : vector<64x64xf32>
    %7 = tpu.iota {dimensions = array<i32: 1>} : vector<64x64xi32>
    %c48_i32 = arith.constant 48 : i32
    %8 = vector.broadcast %c48_i32 : i32 to vector<64x64xi32>
    %9 = arith.cmpi slt, %7, %8 : vector<64x64xi32>
    %10 = arith.select %9, %6, %2 : vector<64x64xi1>, vector<64x64xf32>
    %11 = arith.truncf %10 : vector<64x64xf32> to vector<64x64xbf16>
    %c0_5 = arith.constant 0 : index
    %c0_6 = arith.constant 0 : index
    %12 = vector.load %arg4[%c0_5, %c0_6] : memref<64x128xbf16, #tpu.memory_space<vmem>>, vector<64x128xbf16>
    %cst_7 = arith.constant dense<0.000000e+00> : vector<64x128xf32>
    %13 = tpu.matmul %11, %12, %cst_7 {dimension_numbers = #tpu.dot_dimension_numbers<[1], [0], [0], [1], [0, 0, 1, 1], [], []>} : vector<64x64xbf16>, vector<64x128xbf16>, vector<64x128xf32> -> vector<64x128xf32>
    %c0_8 = arith.constant 0 : index
    %c0_9 = arith.constant 0 : index
    %14 = vector.load %arg5[%c0_8, %c0_9] : memref<1x128xf32, #tpu.memory_space<vmem>>, vector<1x128xf32>
    %15 = vector.broadcast %14 : vector<1x128xf32> to vector<64x128xf32>
    %16 = arith.addf %13, %15 : vector<64x128xf32>
    %c0_10 = arith.constant 0 : index
    %c0_11 = arith.constant 0 : index
    %17 = vector.load %arg6[%c0_10, %c0_11] : memref<64x128xf32, #tpu.memory_space<vmem>>, vector<64x128xf32>
    tpu.vector_store %arg6[%c0_10, %c0_11], %16 {strides = array<i32>} : memref<64x128xf32, #tpu.memory_space<vmem>>, vector<64x128xf32>,
    return
  }
  func.func @transform_0(%arg0: i32) -> (i32, i32) {
    %c0_i32 = arith.constant 0 : i32
    %c0_i32_0 = arith.constant 0 : i32
    return %arg0, %c0_i32 : i32, i32
  }
  func.func @transform_1(%arg0: i32) -> (i32, i32) {
    %c0_i32 = arith.constant 0 : i32
    %c0_i32_0 = arith.constant 0 : i32
    %c0_i32_1 = arith.constant 0 : i32
    return %c0_i32, %c0_i32_0 : i32, i32
  }
  func.func @transform_2(%arg0: i32) -> (i32, i32) {
    %c0_i32 = arith.constant 0 : i32
    %c0_i32_0 = arith.constant 0 : i32
    %c0_i32_1 = arith.constant 0 : i32
    return %c0_i32, %c0_i32_0 : i32, i32
  }
  func.func @transform_3(%arg0: i32) -> (i32, i32) {
    %c0_i32 = arith.constant 0 : i32
    %c0_i32_0 = arith.constant 0 : i32
    %c0_i32_1 = arith.constant 0 : i32
    return %c0_i32, %c0_i32_0 : i32, i32
  }
  func.func @transform_4(%arg0: i32) -> (i32, i32) {
    %c0_i32 = arith.constant 0 : i32
    %c0_i32_0 = arith.constant 0 : i32
    %c0_i32_1 = arith.constant 0 : i32
    return %c0_i32, %c0_i32_0 : i32, i32
  }
  func.func @transform_5(%arg0: i32) -> (i32, i32) {
    %c0_i32 = arith.constant 0 : i32
    %c0_i32_0 = arith.constant 0 : i32
    return %arg0, %c0_i32 : i32, i32
  }
}

</mosaic_0001>

<bundles_post_ra>
// kernel: point_embed.1
= control target key start
LH: loop header
LB: loop body
LE: loop exit
PB: predicated region body
PF: predicated region fallthrough
CT: control target
= control target key end

     0   :  { %10 = vsyncpa [#allocation3], 0  ;;  %s2618_s0 = inlined_call_operand.vmem [shape: f32[128,8], index: 0, kind: input, shape index: {}]   ;;  %s2619_s1 = inlined_call_operand.vmem [shape: f32[8,64], index: 1, kind: input, shape index: {}]   ;;  %s2620_s2 = inlined_call_operand.vmem [shape: f32[1,64], index: 2, kind: input, shape index: {}]   ;;  %s2621_s3 = inlined_call_operand.vmem [shape: bf16[64,128], index: 3, kind: input, shape index: {}]   ;;  %s2622_s4 = inlined_call_operand.vmem [shape: f32[1,128], index: 4, kind: input, shape index: {}]   ;;  %s2623_s5 = inlined_call_operand.hbm [shape: f32[128,128], index: 5, kind: output, shape index: {}]  }
   0x1   :  { %12 = vsyncpa [#allocation3 + $0x1], 0  ;;  %s1766_s18 = smov 0   ;;  %s1768_s19 = smov 0  }
   0x2   :  { %s1770_s20 = smov 0   ;;  %s1772_s21 = smov 0  }
   0x3 LB: > { %s1787_s22 = sadd.s32 4294967295, %s1725_s21   ;;  %s1429_s23 = sadd.s32 4294967294, %s1725_s21   ;;  %s1725_s21 = sphi %s1772_s21, %s2643_s21   ;;  %s1721_s20 = sphi %s1770_s20, %s2642_s20   ;;  %s1717_s19 = sphi %s1768_s19, %s2641_s19   ;;  %s1713_s18 = sphi %s1766_s18, %s2640_s18  }
   0x4   : > { %s1791_s24 = sadd.s32 1, %s1725_s21   ;;  %s135_s25 = sadd.s32 1, %s1721_s20 }
   0x5   : > { %s132_s26 = ssub.s32 %s1725_s21, %s1791_s24  ;;  %p145_p0 = scmp.ne.s32.totalorder %s1721_s20, %s1717_s19 }
   0x6   : > { %p133_p1 = scmp.eq.s32.totalorder %s132_s26, 0  ;;  %p146_p2 = scmp.eq.s32.totalorder %s1787_s22, 1 }
   0x7   : > { %p151_p3 = scmp.ne.s32.totalorder %s1717_s19, %s1713_s18  ;;  %p152_p4 = scmp.eq.s32.totalorder %s1429_s23, 1 }
   0x8   : > { %s1802_s27 = scalar_select %p133_p1, %s1721_s20, %s135_s25  }
   0x9   : > { %p1804_p5 = por %p146_p2, %p145_p0  ;;  %p1808_p6 = por %p152_p4, %p151_p3 }
   0xa   : > { %p1432_p7 = scmp.ge.s32.totalorder %s1725_s21, 1  ;;  %p191_p8 = scmp.lt.s32.totalorder %s1725_s21, 3 }
   0xc   : > { %p192_p9 = pnand %p1432_p7, %p191_p8 }
   0xd   : > { %v235_v0 = vld [vmem:[%s2619_s1] sm:$0xff] (!%p192_p9)  ;;  %s1434_s7 = sshll.u32 (!%p192_p9), %s1787_s22, 3  ;;  %vm236_vm0 = vcmask (!%p192_p9), 64512   ;;  %v1727_v49 = vmov (!%p192_p9), 683565275   ;;  %s1491_s13 = sshll.u32 (!%p192_p9), %s1787_s22, 10 }
   0xe   : > { %195 = sbr.rel (%p192_p9) target bundleno = 712 (0x2c8), region = 40  ;;  %1509 = vmatprep.subr.mxu0 (!%p192_p9), %v235_v0  ;;  %p220_p10 = scmp.lt.s32.totalorder (!%p192_p9), %s1434_s7, 15  ;;  %v1832_v9 = vld [vmem:[%s2620_s2] ss:$0 sm:$0xff] (!%p192_p9)  ;;  %v1728_v53 = vmov (!%p192_p9), 2475754826  }
   0xf   : > { %1510 = vmatpush3.msra.mxu0 (!%p192_p9), %v235_v0  ;;  %v1729_v55 = vmov (!%p192_p9), 2131351028   ;;  %v1730_v57 = vmov (!%p192_p9), 2102212464   ;;  %v1731_v59 = vmov (!%p192_p9), 920167782   ;;  %s2571_s17 = scalar_lea.hbm (!%p192_p9), %s2623_s5, %s1491_s13 }
  0x10   : > { %s1733_s25 = smov (!%p192_p9), [#allocation2]  }
  0x11   : > { %s1667_s26 = sshll.u32 (!%p192_p9), %s1733_s25, 4  ;;  %s1668_s26 = int_to_ptr.vmem [resolvable:$false] %s1667_s26 }
  0x12   : > { %s1669_s30 = scalar_lea.vmem (!%p192_p9), %s1668_s26, 2048 }
  0x15   : > { %s2645_s7 = smov (!%p220_p10, %s1434_s7), 15 }
  0x16   : > { %s1435_s8 = sshll.u32 %s2645_s7, 3 }
  0x17   : > { %s223_s11 = scalar_lea.vmem %s2618_s0, %s1435_s8  ;;  %s216_s8 = sand.u32 1, %s1717_s19  }
  0x18   : > { %v227_v1 = vld [vmem:[%s223_s11] sm:$0xff]  ;;  %v228_v2 = vld [vmem:[%s223_s11 + $0x8] sm:$0xff]  ;;  %v229_v3 = vld [vmem:[%s223_s11 + $0x10] sm:$0xff]  ;;  %s1433_s9 = sshll.u32 %s216_s8, 6  ;;  %s2577_s22 = scalar_lea.sflag [#allocation3], %s216_s8 }
  0x19   : > { %1511 = vmatprep.mubr.msk.f32.mxu0 %vm236_vm0, %v227_v1  ;;  %v230_v4 = vld [vmem:[%s223_s11 + $0x18] sm:$0xff]  ;;  %v231_v5 = vld [vmem:[%s223_s11 + $0x20] sm:$0xff]  ;;  %v232_v6 = vld [vmem:[%s223_s11 + $0x28] sm:$0xff]  ;;  %s218_s12 = scalar_lea.vmem [#allocation2], %s1433_s9 }
  0x1a   : > { %1512 = vmatmul.mubr.msk.f32.vlgmr.msra.gmra.mrb[0].mxu0 %vm236_vm0, %v228_v2  ;;  %v233_v7 = vld [vmem:[%s223_s11 + $0x30] sm:$0xff]  ;;  %v234_v8 = vld [vmem:[%s223_s11 + $0x38] sm:$0xff]  ;;  %v1732_v2 = vmov 1326507024   ;;  %s1367_s14 = sshll.u32 %s218_s12, 4  ;;  %s2573_s14 = int_to_ptr.vmem [resolvable:$true] %s1367_s14 }
  0x1b   : > { %1514 = vmatprep.mubr.msk.f32.mxu0 %vm236_vm0, %v229_v3  ;;  %s1663_s23 = scalar_lea.vmem %s2573_s14, 1024  ;;  %p1670_p0 = scmp.lt.s32.totalorder %s2573_s14, %s1668_s26 }
  0x1c   : > { %p1664_p11 = scmp.ne.s32.totalorder %s2573_s14, %s1663_s23  ;;  %p1671_p1 = scmp.lt.s32.totalorder %s1669_s30, %s1663_s23 }
  0x1e   : > { %1515 = vmatmul.mubr.msk.f32.gmra.mrb[2].mxu0 %vm236_vm0, %v230_v4  ;;  %p1665_p12 = pnand %p1664_p11, %p1804_p5  ;;  %p1672_p2 = por %p1671_p1, %p1670_p0 }
  0x1f   : > { %1517 = vmatprep.mubr.msk.f32.mxu0 %vm236_vm0, %v231_v5 }
  0x20   : > { %p1666_p13 = pneg %p1665_p12 }
  0x22   : > { %1518 = vmatmul.mubr.msk.f32.gmra.mrb[4].mxu0 %vm236_vm0, %v232_v6  ;;  %p1673_p3 = pnand %p1672_p2, %p1666_p13 }
  0x23   : > { %1520 = vmatprep.mubr.msk.f32.mxu0 %vm236_vm0, %v233_v7 }
  0x26   : > { %1521 = vmatmul.mubr.msk.f32.gmra.mrb[6].mxu0 %vm236_vm0, %v234_v8 }
  0xed   : > { %v1834_v10 = vpop.f32.mrb[0].mxu0 }
  0xee   : > { %v1838_v11 = vadd.f32 %v1834_v10, %v1832_v9  ;;  %v1840_v12 = vpop.f32.mrb[1].mxu0 }
  0xef   : > { %v1844_v13 = vadd.f32 %v1832_v9, %v1840_v12 }
  0xf0   : > { %v485_v14 = vand.u32 2147483647, %v1838_v11  ;;  %v488_v15 = vand.u32 2139095040, %v1838_v11  ;;  %vm487_vm14 = vcmp.lt.s32.totalorder %v1838_v11, 0 }
  0xf1   : > { %v381_v16 = vand.u32 2147483647, %v1844_v13  ;;  %v384_v17 = vand.u32 2139095040, %v1844_v13  ;;  %v1850_v18 = vpop.f32.mrb[2].mxu0  ;;  %vm383_vm15 = vcmp.lt.s32.totalorder %v1844_v13, 0 }
  0xf2   : > { %v489_v19 = vshrl.u32 %v488_v15, 23  ;;  %v492_v20 = vand.u32 8388607, %v485_v14  ;;  %v1856_v21 = vadd.f32 %v1850_v18, %v1832_v9  ;;  %v1858_v22 = vpop.f32.mrb[3].mxu0 }
  0xf3   : > { %v385_v23 = vshrl.u32 %v384_v17, 23  ;;  %v388_v24 = vand.u32 8388607, %v381_v16  ;;  %v1872_v42 = vadd.f32 %v1832_v9, %v1858_v22 }
  0xf4   : > { %v1449_v25 = vadd.s32 4294967169, %v489_v19  ;;  %v696_v27 = vand.u32 2139095040, %v1856_v21  ;;  %v493_v29 = vor.u32 8388608, %v492_v20  ;;  %v693_v33 = vand.u32 2147483647, %v1856_v21 }
  0xf5   : > { %v1445_v26 = vadd.s32 4294967169, %v385_v23  ;;  %v1863_v28 = vpop.f32.mrb[4].mxu0  ;;  %v389_v31 = vor.u32 8388608, %v388_v24 }
  0xf6   : > { %v495_v30 = vadd.s32 1, %v1449_v25  ;;  %v697_v34 = vshrl.u32 %v696_v27, 23  ;;  %v1866_v35 = vpop.f32.mrb[5].mxu0  ;;  %v1874_v43 = vshll.u32 %v493_v29, 8  ;;  %v1882_v46 = vand.u32 8388607, %v693_v33 }
  0xf7   : > { %v391_v32 = vadd.s32 1, %v1445_v26  ;;  %v1878_v45 = vshll.u32 %v389_v31, 8 }
  0xf8   : > { %vm496_vm1 = vcmp.gt.s32.totalorder %v495_v30, 0  ;;  %v1457_v37 = vadd.s32 4294967169, %v697_v34 }
  0xf9   : > { %v497_v36 = vsel %vm496_vm1, %v495_v30, 0  ;;  %vm392_vm2 = vcmp.gt.s32.totalorder %v391_v32, 0  ;;  %v1868_v38 = vpop.f32.mrb[6].mxu0  ;;  %vm1985_vm1 = vcmp.le.f32.partialorder %v485_v14, 0.7853982 }
  0xfa   : > { %v498_v39 = vshrl.u32 %v497_v36, 5  ;;  %v499_v40 = vand.u32 31, %v497_v36  ;;  %v393_v41 = vsel %vm392_vm2, %v391_v32, 0  ;;  %v1884_v47 = vpop.f32.mrb[7].mxu0  ;;  %v1887_v52 = vadd.s32 1, %v1457_v37 }
  0xfb   : > { %v1876_v44 = vshrl.u32 %v393_v41, 5  ;;  %v395_v51 = vand.u32 31, %v393_v41 }
  0xfc   : > { %v500_v48 = vsub.s32 32, %v499_v40  ;;  %v502_v50 = vshll.u32 %v1727_v49, %v499_v40  ;;  %v505_v54 = vshll.u32 %v1728_v53, %v499_v40  ;;  %v508_v56 = vshll.u32 %v1729_v55, %v499_v40 }
  0xfd   : > { %v511_v58 = vshll.u32 %v1730_v57, %v499_v40  ;;  %v514_v60 = vshll.u32 %v1731_v59, %v499_v40  ;;  %vm517_vm3 = vcmp.lt.s32.totalorder %v498_v39, 1  ;;  %vm518_vm4 = vcmp.lt.s32.totalorder %v498_v39, 2 }
  0xfe   : > { %v503_v61 = vshrl.u32 %v1728_v53, %v500_v48  ;;  %v506_v62 = vshrl.u32 %v1729_v55, %v500_v48  ;;  %v509_v63 = vshrl.u32 %v1730_v57, %v500_v48  ;;  %v501_v0 = vshrl.u32 %v1727_v49, %v500_v48 }
  0xff   : > { %v512_v1 = vshrl.u32 %v1731_v59, %v500_v48  ;;  %v515_v3 = vshrl.u32 %v1732_v2, %v500_v48  ;;  %v396_v7 = vsub.s32 32, %v395_v51  ;;  %vm519_vm5 = vcmp.lt.s32.totalorder %v498_v39, 3 }
 0x100   : > { %v504_v4 = vor.u32 %v503_v61, %v502_v50  ;;  %v507_v5 = vor.u32 %v506_v62, %v505_v54  ;;  %v510_v6 = vor.u32 %v509_v63, %v508_v56  ;;  %vm520_vm6 = vcmp.lt.s32.totalorder %v498_v39, 4 }
 0x101   : > { %v513_v8 = vor.u32 %v512_v1, %v511_v58  ;;  %v516_v15 = vor.u32 %v515_v3, %v514_v60  ;;  %v398_v27 = vshll.u32 %v1727_v49, %v395_v51  ;;  %v399_v31 = vshrl.u32 %v1728_v53, %v396_v7 }
 0x102   : > { %v521_v17 = vsel %vm517_vm3, %v501_v0, %v504_v4  ;;  %v522_v19 = vsel %vm520_vm6, %v510_v6, 2102212464  ;;  %v525_v20 = vsel %vm517_vm3, %v504_v4, %v507_v5  ;;  %v529_v23 = vsel %vm517_vm3, %v507_v5, %v510_v6 }
 0x103   : > { %v523_v24 = vsel %vm519_vm5, %v507_v5, %v522_v19  ;;  %v526_v25 = vsel %vm520_vm6, %v513_v8, 920167782  ;;  %v530_v26 = vsel %vm520_vm6, %v516_v15, 1326507024  ;;  %v401_v32 = vshll.u32 %v1728_v53, %v395_v51 }
 0x104   : > { %v527_v29 = vsel %vm519_vm5, %v510_v6, %v526_v25  ;;  %v531_v30 = vsel %vm519_vm5, %v513_v8, %v530_v26  ;;  %v524_v34 = vsel %vm518_vm4, %v521_v17, %v523_v24  ;;  %v402_v40 = vshrl.u32 %v1729_v55, %v396_v7 }
 0x105   : > { %v528_v36 = vsel %vm518_vm4, %v525_v20, %v527_v29  ;;  %v532_v37 = vsel %vm518_vm4, %v529_v23, %v531_v30  ;;  %v400_v56 = vor.u32 %v399_v31, %v398_v27  ;;  %v404_v60 = vshll.u32 %v1729_v55, %v395_v51 }
 0x106   : > { %v1910_v41 = vmul.u32.u64.low %v1874_v43, %v532_v37  ;;  %v1911_v48 = vmul.u32.u64.high %v1874_v43, %v532_v37, %v1910_v41  ;;  %v1914_v50 = vmul.u32.u64.low %v1874_v43, %v528_v36  ;;  %v1915_v54 = vmul.u32.u64.high %v1874_v43, %v528_v36, %v1914_v50 }
 0x107   : > { %v403_v58 = vor.u32 %v402_v40, %v401_v32  ;;  %v405_v61 = vshrl.u32 %v1730_v57, %v396_v7  ;;  %v397_v62 = vshrl.u32 %v1727_v49, %v396_v7  ;;  %v407_v39 = vshll.u32 %v1730_v57, %v395_v51 }
 0x108   : > { %v408_v63 = vshrl.u32 %v1731_v59, %v396_v7  ;;  %v411_v0 = vshrl.u32 %v1732_v2, %v396_v7  ;;  %v540_v1 = vmul.u32 %v1874_v43, %v524_v34  ;;  %v410_v4 = vshll.u32 %v1731_v59, %v395_v51 }
 0x109   : > { %v406_v3 = vor.u32 %v405_v61, %v404_v60  ;;  %vm413_vm7 = vcmp.lt.s32.totalorder %v1876_v44, 1  ;;  %vm542_vm8 = vc.u32 %v1911_v48, %v1914_v50  ;;  %v543_v5 = vadd.s32 1, %v1915_v54 }
 0x10a   : > { %v409_v6 = vor.u32 %v408_v63, %v407_v39  ;;  %vm414_vm9 = vcmp.lt.s32.totalorder %v1876_v44, 2  ;;  %v412_v8 = vor.u32 %v411_v0, %v410_v4  ;;  %vm415_vm10 = vcmp.lt.s32.totalorder %v1876_v44, 3 }
 0x10b   : > { %vm416_vm11 = vcmp.lt.s32.totalorder %v1876_v44, 4  ;;  %v421_v7 = vsel %vm413_vm7, %v400_v56, %v403_v58  ;;  %v544_v43 = vsel %vm542_vm8, %v543_v5, %v1915_v54  ;;  %v425_v51 = vsel %vm413_vm7, %v403_v58, %v406_v3 }
 0x10c   : > { %v418_v15 = vsel %vm416_vm11, %v406_v3, 2102212464  ;;  %v422_v17 = vsel %vm416_vm11, %v409_v6, 920167782  ;;  %v545_v19 = vadd.s32 %v544_v43, %v540_v1  ;;  %v417_v20 = vsel %vm413_vm7, %v397_v62, %v400_v56 }
 0x10d   : > { %v423_v23 = vsel %vm415_vm10, %v406_v3, %v422_v17  ;;  %v426_v24 = vsel %vm416_vm11, %v412_v8, 1326507024  ;;  %v419_v25 = vsel %vm415_vm10, %v403_v58, %v418_v15  ;;  %vm704_vm12 = vcmp.gt.s32.totalorder %v1887_v52, 0 }
 0x10e   : > { %v424_v26 = vsel %vm414_vm9, %v421_v7, %v423_v23  ;;  %v427_v27 = vsel %vm415_vm10, %v409_v6, %v426_v24  ;;  %v546_v29 = vadd.s32 536870912, %v545_v19  ;;  %v705_v37 = vsel %vm704_vm12, %v1887_v52, 0 }
 0x10f   : > { %v428_v30 = vsel %vm414_vm9, %v425_v51, %v427_v27  ;;  %v1938_v31 = vmul.u32.u64.low %v1878_v45, %v424_v26  ;;  %v1939_v32 = vmul.u32.u64.high %v1878_v45, %v424_v26, %v1938_v31  ;;  %v420_v41 = vsel %vm414_vm9, %v417_v20, %v419_v25 }
 0x110   : > { %v1943_v34 = vmul.u32.u64.low %v1878_v45, %v428_v30  ;;  %v1944_v36 = vmul.u32.u64.high %v1878_v45, %v428_v30, %v1943_v34  ;;  %v1947_v40 = vshrl.u32 %v546_v29, 30  ;;  %v707_v54 = vand.u32 31, %v705_v37 }
 0x111   : > { %v592_v56 = vand.u32 2139095040, %v1872_v42  ;;  %v439_v60 = vadd.s32 1, %v1939_v32  ;;  %v701_v61 = vor.u32 8388608, %v1882_v46  ;;  %v436_v62 = vmul.u32 %v1878_v45, %v420_v41 }
 0x112   : > { %v548_v58 = vshll.u32 %v1947_v40, 30  ;;  %vm438_vm13 = vc.u32 %v1944_v36, %v1938_v31  ;;  %v708_v52 = vsub.s32 32, %v707_v54  ;;  %v1213_v3 = vlaneseq }
 0x113   : > { %v440_v44 = vsel %vm438_vm13, %v439_v60, %v1939_v32  ;;  %v593_v0 = vshrl.u32 %v592_v56, 23  ;;  %v1962_v4 = vshll.u32 %v701_v61, 8  ;;  %v589_v5 = vand.u32 2147483647, %v1872_v42 }
 0x114   : > { %v1958_v39 = vsub.s32 %v545_v19, %v548_v58  ;;  %v441_v63 = vadd.s32 %v440_v44, %v436_v62  ;;  %v541_v46 = vadd.s32 %v1914_v50, %v1911_v48  ;;  %v711_v6 = vshrl.u32 %v1728_v53, %v708_v52 }
 0x115   : > { %v714_v8 = vshrl.u32 %v1729_v55, %v708_v52  ;;  %v706_v43 = vshrl.u32 %v705_v37, 5  ;;  %v717_v15 = vshrl.u32 %v1730_v57, %v708_v52  ;;  %v720_v17 = vshrl.u32 %v1731_v59, %v708_v52 }
 0x116   : > { %v551_v1 = vsub.s32 0, %v1958_v39  ;;  %v442_v45 = vadd.s32 536870912, %v441_v63  ;;  %v710_v19 = vshll.u32 %v1727_v49, %v707_v54  ;;  %v713_v20 = vshll.u32 %v1728_v53, %v707_v54 }
 0x117   : > { %v1453_v23 = vadd.s32 4294967169, %v593_v0  ;;  %v716_v50 = vshll.u32 %v1729_v55, %v707_v54  ;;  %v719_v24 = vshll.u32 %v1730_v57, %v707_v54  ;;  %v723_v25 = vshrl.u32 %v1732_v2, %v708_v52 }
 0x118   : > { %v1450_v7 = vmin.u32 %v551_v1, %v1958_v39  ;;  %v443_v51 = vshrl.u32 %v442_v45, 30  ;;  %v571_v26 = vsub.s32 4, %v1947_v40  ;;  %v712_v29 = vor.u32 %v711_v6, %v710_v19 }
 0x119   : > { %v715_v30 = vor.u32 %v714_v8, %v713_v20  ;;  %v718_v34 = vor.u32 %v717_v15, %v716_v50  ;;  %v721_v37 = vor.u32 %v720_v17, %v719_v24  ;;  %v722_v41 = vshll.u32 %v1731_v59, %v707_v54 }
 0x11a   : > { %v553_v48 = vclz %v1450_v7  ;;  %v444_v27 = vshll.u32 %v443_v51, 30  ;;  %v467_v58 = vsub.s32 4, %v443_v51  ;;  %v709_v60 = vshrl.u32 %v1727_v49, %v708_v52 }
 0x11b   : > { %vm725_vm0 = vcmp.lt.s32.totalorder %v706_v43, 1  ;;  %v724_v62 = vor.u32 %v723_v25, %v722_v41  ;;  %vm726_vm3 = vcmp.lt.s32.totalorder %v706_v43, 2  ;;  %vm727_vm4 = vcmp.lt.s32.totalorder %v706_v43, 3 }
 0x11c   : > { %v1451_v32 = vadd.s32 4294967294, %v553_v48  ;;  %v1980_v56 = vsub.s32 %v441_v63, %v444_v27  ;;  %vm1991_vm5 = vcmp.le.f32.partialorder %v381_v16, 0.7853982  ;;  %vm728_vm6 = vcmp.lt.s32.totalorder %v706_v43, 4 }
 0x11d   : > { %v733_v63 = vsel %vm725_vm0, %v712_v29, %v715_v30  ;;  %v730_v1 = vsel %vm728_vm6, %v718_v34, 2102212464  ;;  %v734_v45 = vsel %vm728_vm6, %v721_v37, 920167782  ;;  %v737_v16 = vsel %vm725_vm0, %v715_v30, %v718_v34 }
 0x11e   : > { %vm1452_vm2 = vcmp.lt.s32.totalorder %v1451_v32, 0  ;;  %v447_v52 = vsub.s32 0, %v1980_v56  ;;  %v735_v7 = vsel %vm727_vm4, %v718_v34, %v734_v45  ;;  %v738_v20 = vsel %vm728_vm6, %v724_v62, 1326507024 }
 0x11f   : > { %v556_v44 = vsel %vm1452_vm2, 0, %v1451_v32  ;;  %v736_v19 = vsel %vm726_vm3, %v733_v63, %v735_v7  ;;  %v572_v48 = vsel %vm487_vm14, %v571_v26, %v1947_v40  ;;  %v729_v24 = vsel %vm725_vm0, %v709_v60, %v712_v29 }
 0x120   : > { %v557_v14 = vsub.s32 32, %v556_v44  ;;  %v561_v0 = vsub.s32 4294967266, %v556_v44  ;;  %v558_v6 = vshll.u32 %v1958_v39, %v556_v44  ;;  %v1446_v8 = vmin.u32 %v447_v52, %v1980_v56 }
 0x121   : > { %v731_v39 = vsel %vm727_vm4, %v715_v30, %v730_v1  ;;  %v468_v32 = vsel %vm383_vm15, %v467_v58, %v443_v51  ;;  %v2012_v62 = vmul.u32.u64.low %v1962_v4, %v736_v19  ;;  %v2013_v44 = vmul.u32.u64.high %v1962_v4, %v736_v19, %v2012_v62 }
 0x122   : > { %v559_v15 = vshrl.u32 %v541_v46, %v557_v14  ;;  %v562_v17 = vadd.s32 127, %v561_v0  ;;  %v449_v50 = vclz %v1446_v8  ;;  %v739_v46 = vsel %vm727_vm4, %v721_v37, %v738_v20 }
 0x123   : > { %v740_v41 = vsel %vm726_vm3, %v737_v16, %v739_v46  ;;  %v732_v26 = vsel %vm726_vm3, %v729_v24, %v731_v39  ;;  %v574_v51 = vsel %vm1985_vm1, 0, %v572_v48  ;;  %v437_v37 = vadd.s32 %v1938_v31, %v1944_v36 }
 0x124   : > { %v560_v25 = vor.u32 %v559_v15, %v558_v6  ;;  %v563_v27 = vshll.u32 %v562_v17, 23  ;;  %v1447_v34 = vadd.s32 4294967294, %v449_v50  ;;  %v599_v58 = vadd.s32 1, %v1453_v23 }
 0x125   : > { %v2018_v29 = vmul.u32.u64.low %v1962_v4, %v740_v41  ;;  %v2019_v30 = vmul.u32.u64.high %v1962_v4, %v740_v41, %v2018_v29  ;;  %v470_v14 = vsel %vm1991_vm5, 0, %v468_v32  ;;  %v748_v1 = vmul.u32 %v1962_v4, %v732_v26 }
 0x126   : > { %v564_v40 = vor.u32 4788187, %v563_v27  ;;  %vm1448_vm7 = vcmp.lt.s32.totalorder %v1447_v34, 0  ;;  %v567_v52 = vcvt.s32.f32 %v560_v25  ;;  %v751_v45 = vadd.s32 1, %v2013_v44 }
 0x127   : > { %v452_v63 = vsel %vm1448_vm7, 0, %v1447_v34  ;;  %vm750_vm8 = vc.u32 %v2019_v30, %v2012_v62  ;;  %vm600_vm9 = vcmp.gt.s32.totalorder %v599_v58, 0  ;;  %v578_v15 = vadd.s32 3, %v574_v51 }
 0x128   : > { %v565_v60 = vand.u32 2147483647, %v564_v40  ;;  %v453_v43 = vsub.s32 32, %v452_v63  ;;  %v457_v0 = vsub.s32 4294967266, %v452_v63  ;;  %v454_v8 = vshll.u32 %v1980_v56, %v452_v63 }
 0x129   : > { %v752_v23 = vsel %vm750_vm8, %v751_v45, %v2013_v44  ;;  %v601_v7 = vsel %vm600_vm9, %v599_v58, 0  ;;  %v596_v48 = vand.u32 8388607, %v589_v5  ;;  %v474_v50 = vadd.s32 3, %v470_v14 }
 0x12a   : > { %v568_v6 = vmul.f32 %v567_v52, %v565_v60  ;;  %v455_v31 = vshrl.u32 %v437_v37, %v453_v43  ;;  %v458_v36 = vadd.s32 127, %v457_v0  ;;  %v753_v17 = vadd.s32 %v752_v23, %v748_v1 }
 0x12b   : > { %v603_v19 = vand.u32 31, %v601_v7  ;;  %v2040_v32 = vand.u32 3, %v578_v15  ;;  %v2043_v46 = vand.u32 127, %v1213_v3  ;;  %v2049_v40 = vadd.f32 %v1863_v28, %v1832_v9 }
 0x12c   : > { %v569_v16 = vxor.u32 2147483648, %v568_v6  ;;  %v456_v20 = vor.u32 %v455_v31, %v454_v8  ;;  %v459_v4 = vshll.u32 %v458_v36, 23  ;;  %v754_v24 = vadd.s32 536870912, %v753_v17 }
 0x12d   : > { %v604_v39 = vsub.s32 32, %v603_v19  ;;  %v2051_v26 = vand.u32 3, %v474_v50  ;;  %v597_v29 = vor.u32 8388608, %v596_v48  ;;  %v615_v58 = vshll.u32 %v1730_v57, %v603_v19 }
 0x12e   : > { %v570_v56 = vsel %vm487_vm14, %v569_v16, %v568_v6  ;;  %v460_v27 = vor.u32 4788187, %v459_v4  ;;  %v2045_v34 = vshrl.u32 %v754_v24, 30  ;;  %v463_v44 = vcvt.s32.f32 %v456_v20 }
 0x12f   : > { %v573_v25 = vsel %vm1985_vm1, %v1838_v11, %v570_v56  ;;  %v607_v51 = vshrl.u32 %v1728_v53, %v604_v39  ;;  %v610_v3 = vshrl.u32 %v1729_v55, %v604_v39  ;;  %v616_v60 = vshrl.u32 %v1731_v59, %v604_v39 }
 0x130   : > { %1630 = vcosq.f32 %v573_v25  ;;  %v461_v41 = vand.u32 2147483647, %v460_v27  ;;  %v756_v61 = vshll.u32 %v2045_v34, 30  ;;  %vm584_vm10 = vcmp.eq.s32.totalorder %v2040_v32, 2 }
 0x131   : > { %1632 = vsinq.f32 %v573_v25  ;;  %v2061_v63 = vshrl.u32 %v601_v7, 5  ;;  %v606_v14 = vshll.u32 %v1727_v49, %v603_v19  ;;  %v613_v43 = vshrl.u32 %v1730_v57, %v604_v39 }
 0x132   : > { %v464_v37 = vmul.f32 %v463_v44, %v461_v41  ;;  %v2059_v52 = vsub.s32 %v753_v17, %v756_v61  ;;  %vm581_vm11 = vcmp.eq.s32.totalorder %v2040_v32, 0  ;;  %v609_v1 = vshll.u32 %v1728_v53, %v603_v19 }
 0x133   : > { %v617_v45 = vor.u32 %v616_v60, %v615_v58  ;;  %v619_v6 = vshrl.u32 %v1732_v2, %v604_v39  ;;  %vm580_vm12 = vcmp.lt.s32.totalorder %v2040_v32, 2  ;;  %vm1215_vm13 = vcmp.lt.s32.totalorder %v2043_v46, 48 }
 0x134   : > { %v465_v0 = vxor.u32 2147483648, %v464_v37  ;;  %v749_v8 = vadd.s32 %v2012_v62, %v2019_v30  ;;  %v759_v31 = vsub.s32 0, %v2059_v52  ;;  %v612_v36 = vshll.u32 %v1729_v55, %v603_v19 }
 0x135   : > { %v904_v23 = vand.u32 2139095040, %v2049_v40  ;;  %vm577_vm14 = vweird.f32 %v1838_v11  ;;  %v608_v16 = vor.u32 %v607_v51, %v606_v14  ;;  %v611_v15 = vor.u32 %v610_v3, %v609_v1 }
 0x136   : > { %v466_v7 = vsel %vm383_vm15, %v465_v0, %v464_v37  ;;  %v618_v17 = vshll.u32 %v1731_v59, %v603_v19  ;;  %v1458_v62 = vmin.u32 %v759_v31, %v2059_v52  ;;  %v614_v30 = vor.u32 %v613_v43, %v612_v36 }
 0x137   : > { %v469_v20 = vsel %vm1991_vm5, %v1844_v13, %v466_v7  ;;  %vm624_vm0 = vcmp.lt.s32.totalorder %v2061_v63, 4  ;;  %v605_v4 = vshrl.u32 %v1727_v49, %v604_v39  ;;  %vm621_vm15 = vcmp.lt.s32.totalorder %v2061_v63, 1 }
 0x138   : > { %1634 = vcosq.f32 %v469_v20  ;;  %v620_v48 = vor.u32 %v619_v6, %v618_v17  ;;  %v630_v56 = vsel %vm624_vm0, %v617_v45, 920167782  ;;  %v761_v24 = vclz %v1458_v62 }
 0x139   : > { %1636 = vsinq.f32 %v469_v20  ;;  %v2088_v19 = vshll.u32 %v597_v29, 8  ;;  %vm622_vm1 = vcmp.lt.s32.totalorder %v2061_v63, 2  ;;  %vm623_vm2 = vcmp.lt.s32.totalorder %v2061_v63, 3 }
 0x13a   : > { %v1631_v50 = vpop.eup %1630  ;;  %v625_v27 = vsel %vm621_vm15, %v605_v4, %v608_v16  ;;  %v1459_v39 = vadd.s32 4294967294, %v761_v24  ;;  %v629_v44 = vsel %vm621_vm15, %v608_v16, %v611_v15  ;;  %v631_v61 = vsel %vm623_vm2, %v614_v30, %v630_v56 }
 0x13b   : > { %v1633_v54 = vpop.eup %1632  ;;  %v585_v25 = vxor.u32 2147483648, %v1631_v50  ;;  %v626_v29 = vsel %vm624_vm0, %v614_v30, 2102212464  ;;  %v633_v37 = vsel %vm621_vm15, %v611_v15, %v614_v30  ;;  %v634_v3 = vsel %vm624_vm0, %v620_v48, 1326507024 }
 0x13c   : > { %v582_v41 = vxor.u32 2147483648, %v1633_v54  ;;  %vm1460_vm3 = vcmp.lt.s32.totalorder %v1459_v39, 0  ;;  %v635_v60 = vsel %vm623_vm2, %v617_v45, %v634_v3  ;;  %v905_v14 = vshrl.u32 %v904_v23, 23 }
 0x13d   : > { %v586_v51 = vsel %vm584_vm10, %v585_v25, %v1633_v54  ;;  %v764_v0 = vsel %vm1460_vm3, 0, %v1459_v39  ;;  %v632_v1 = vsel %vm622_vm1, %v629_v44, %v631_v61  ;;  %v636_v6 = vsel %vm622_vm1, %v633_v37, %v635_v60 }
 0x13e   : > { %v583_v58 = vsel %vm581_vm11, %v1631_v50, %v582_v41  ;;  %vm473_vm4 = vweird.f32 %v1844_v13  ;;  %v765_v36 = vsub.s32 32, %v764_v0  ;;  %v769_v7 = vsub.s32 4294967266, %v764_v0 }
 0x13f   : > { %v587_v43 = vsel %vm580_vm12, %v583_v58, %v586_v51  ;;  %v627_v45 = vsel %vm623_vm2, %v611_v15, %v626_v29  ;;  %v2121_v23 = vmul.u32.u64.low %v2088_v19, %v636_v6  ;;  %v2122_v16 = vmul.u32.u64.high %v2088_v19, %v636_v6, %v2121_v23 }
 0x140   : > { %v588_v31 = vsel %vm577_vm14, nan, %v587_v43  ;;  %v1465_v17 = vadd.s32 4294967169, %v905_v14  ;;  %v767_v20 = vshrl.u32 %v749_v8, %v765_v36  ;;  %v770_v11 = vadd.s32 127, %v769_v7 }
 0x141   : > { %v2118_v32 = vsel %vm1215_vm13, %v588_v31, %v1834_v10  ;;  %v2125_v62 = vmul.u32.u64.low %v2088_v19, %v632_v1  ;;  %v2126_v30 = vmul.u32.u64.high %v2088_v19, %v632_v1, %v2125_v62  ;;  %vm476_vm5 = vcmp.lt.s32.totalorder %v2051_v26, 2 }
 0x142   : > { %v1635_v4 = vpop.eup %1634  ;;  %vm477_vm6 = vcmp.eq.s32.totalorder %v2051_v26, 0  ;;  %v901_v10 = vand.u32 2147483647, %v2049_v40  ;;  %v911_v15 = vadd.s32 1, %v1465_v17  ;;  %v766_v50 = vshll.u32 %v2059_v52, %v764_v0  ;;  %v1626_v0 = vld [vmem:[%s2621_s3] sm:$0xff]  }
 0x143   : > { %v1637_v48 = vpop.eup %1636  ;;  %v481_v56 = vxor.u32 2147483648, %v1635_v4  ;;  %v771_v24 = vshll.u32 %v770_v11, 23  ;;  %v628_v8 = vsel %vm622_vm1, %v625_v27, %v627_v45  ;;  %vm480_vm7 = vcmp.eq.s32.totalorder %v2051_v26, 2  ;;  %1523 = vmatprep.subr.bf16.mxu0 %v1626_v0  ;;  %1539 = vmatprep.subr.bf16.mxu1 %v1626_v0 }
 0x144   : > { %v478_v54 = vxor.u32 2147483648, %v1637_v48  ;;  %vm646_vm8 = vc.u32 %v2122_v16, %v2125_v62  ;;  %vm912_vm9 = vcmp.gt.s32.totalorder %v911_v15, 0  ;;  %v768_v41 = vor.u32 %v767_v20, %v766_v50  ;;  %1524 = vmatpush3.bf16.msra.mxu0 %v1626_v0  ;;  %1543 = vmatpush3.bf16.msra.mxu1 %v1626_v0 }
 0x145   : > { %v482_v25 = vsel %vm480_vm7, %v481_v56, %v1637_v48  ;;  %v772_v39 = vor.u32 4788187, %v771_v24  ;;  %v647_v44 = vadd.s32 1, %v2126_v30  ;;  %v779_v52 = vsub.s32 4, %v2045_v34  ;;  %v1627_v48 = vld [vmem:[%s2621_s3 + $0x8] sm:$0xff]  }
 0x146   : > { %v479_v61 = vsel %vm477_vm6, %v1635_v4, %v478_v54  ;;  %v644_v63 = vmul.u32 %v2088_v19, %v628_v8  ;;  %v913_v27 = vsel %vm912_vm9, %v911_v15, 0  ;;  %v908_v3 = vand.u32 8388607, %v901_v10  ;;  %1525 = vmatprep.subr.bf16.mxu0 %v1627_v48  ;;  %1540 = vmatprep.subr.bf16.mxu1 %v1627_v48 }
 0x147   : > { %v483_v51 = vsel %vm476_vm5, %v479_v61, %v482_v25  ;;  %v773_v29 = vand.u32 2147483647, %v772_v39  ;;  %v648_v37 = vsel %vm646_vm8, %v647_v44, %v2126_v30  ;;  %v915_v14 = vand.u32 31, %v913_v27 }
 0x148   : > { %v484_v58 = vsel %vm473_vm4, nan, %v483_v51  ;;  %v649_v60 = vadd.s32 %v648_v37, %v644_v63  ;;  %vm695_vm10 = vcmp.lt.s32.totalorder %v1856_v21, 0  ;;  %v775_v26 = vcvt.s32.f32 %v768_v41  ;;  %1526 = vmatpush3.bf16.msra.mxu0 %v1627_v48  ;;  %1544 = vmatpush3.bf16.msra.mxu1 %v1627_v48  ;;  %v1628_v51 = vld [vmem:[%s2621_s3 + $0x10] sm:$0xff]  }
 0x149   : > { %v2153_v43 = vsel %vm1215_vm13, %v484_v58, %v1840_v12  ;;  %v2158_v19 = vadd.f32 %v1832_v9, %v1866_v35  ;;  %v2168_v1 = vsel %vm695_vm10, %v779_v52, %v2045_v34  ;;  %v916_v6 = vsub.s32 32, %v915_v14  ;;  %1527 = vmatprep.subr.bf16.mxu0 %v1628_v51  ;;  %1541 = vmatprep.subr.bf16.mxu1 %v1628_v51 }
 0x14a   : > { %v1224_v13 = vpack.c.bf16 %v2118_v32, %v2153_v43  ;;  %v650_v12 = vadd.s32 536870912, %v649_v60  ;;  %v776_v31 = vmul.f32 %v775_v26, %v773_v29  ;;  %v909_v36 = vor.u32 8388608, %v908_v3 }
 0x14b   : > { %v2170_v7 = vshrl.u32 %v913_v27, 5  ;;  %v918_v45 = vshll.u32 %v1727_v49, %v915_v14  ;;  %v919_v17 = vshrl.u32 %v1728_v53, %v916_v6  ;;  %v921_v20 = vshll.u32 %v1728_v53, %v915_v14 }
 0x14c   : > { %v651_v23 = vshrl.u32 %v650_v12, 30  ;;  %v922_v11 = vshrl.u32 %v1729_v55, %v916_v6  ;;  %v924_v34 = vshll.u32 %v1729_v55, %v915_v14  ;;  %v925_v30 = vshrl.u32 %v1730_v57, %v916_v6  ;;  %1528 = vmatpush3.bf16.msra.mxu0 %v1628_v51  ;;  %1545 = vmatpush3.bf16.msra.mxu1 %v1628_v51 }
 0x14d   : > { %v927_v4 = vshll.u32 %v1730_v57, %v915_v14  ;;  %v928_v15 = vshrl.u32 %v1731_v59, %v916_v6  ;;  %vm2185_vm11 = vcmp.le.f32.partialorder %v693_v33, 0.7853982  ;;  %vm591_vm12 = vcmp.lt.s32.totalorder %v1872_v42, 0 }
 0x14e   : > { %v652_v50 = vshll.u32 %v651_v23, 30  ;;  %v920_v24 = vor.u32 %v919_v17, %v918_v45  ;;  %v782_v8 = vsel %vm2185_vm11, 0, %v2168_v1  ;;  %v923_v54 = vor.u32 %v922_v11, %v921_v20 }
 0x14f   : > { %v926_v25 = vor.u32 %v925_v30, %v924_v34  ;;  %v929_v41 = vor.u32 %v928_v15, %v927_v4  ;;  %v777_v39 = vxor.u32 2147483648, %v776_v31  ;;  %v930_v33 = vshll.u32 %v1731_v59, %v915_v14 }
 0x150   : > { %v2193_v44 = vsub.s32 %v649_v60, %v652_v50  ;;  %v931_v61 = vshrl.u32 %v1732_v2, %v916_v6  ;;  %v917_v52 = vshrl.u32 %v1727_v49, %v916_v6  ;;  %vm933_vm14 = vcmp.lt.s32.totalorder %v2170_v7, 1 }
 0x151   : > { %v2199_v63 = vshll.u32 %v909_v36, 8  ;;  %v800_v27 = vand.u32 2139095040, %v2158_v19  ;;  %v675_v37 = vsub.s32 4, %v651_v23  ;;  %vm936_vm0 = vcmp.lt.s32.totalorder %v2170_v7, 4 }
 0x152   : > { %v655_v29 = vsub.s32 0, %v2193_v44  ;;  %v932_v3 = vor.u32 %v931_v61, %v930_v33  ;;  %vm935_vm15 = vcmp.lt.s32.totalorder %v2170_v7, 3  ;;  %v938_v58 = vsel %vm936_vm0, %v926_v25, 2102212464 }
 0x153   : > { %v941_v60 = vsel %vm933_vm14, %v920_v24, %v923_v54  ;;  %v942_v14 = vsel %vm936_vm0, %v929_v41, 920167782  ;;  %v778_v26 = vsel %vm695_vm10, %v777_v39, %v776_v31  ;;  %vm934_vm1 = vcmp.lt.s32.totalorder %v2170_v7, 2  ;;  %v1629_v31 = vld [vmem:[%s2621_s3 + $0x18] sm:$0xff]  }
 0x154   : > { %v1454_v0 = vmin.u32 %v655_v29, %v2193_v44  ;;  %v943_v1 = vsel %vm935_vm15, %v926_v25, %v942_v14  ;;  %v945_v6 = vsel %vm933_vm14, %v923_v54, %v926_v25  ;;  %v946_v36 = vsel %vm936_vm0, %v932_v3, 1326507024  ;;  %1529 = vmatprep.subr.bf16.mxu0 %v1629_v31  ;;  %1542 = vmatprep.subr.bf16.mxu1 %v1629_v31 }
 0x155   : > { %v944_v12 = vsel %vm934_vm1, %v941_v60, %v943_v1  ;;  %v801_v45 = vshrl.u32 %v800_v27, 23  ;;  %v676_v20 = vsel %vm591_vm12, %v675_v37, %v651_v23  ;;  %v937_v11 = vsel %vm933_vm14, %v917_v52, %v920_v24  ;;  %1530 = vmatpush3.bf16.msra.mxu0 %v1629_v31  ;;  %1546 = vmatpush3.bf16.msra.mxu1 %v1629_v31 }
 0x156   : > { %v657_v17 = vclz %v1454_v0  ;;  %v939_v34 = vsel %vm935_vm15, %v923_v54, %v938_v58  ;;  %v947_v30 = vsel %vm935_vm15, %v929_v41, %v946_v36  ;;  %v781_v23 = vsel %vm2185_vm11, %v1856_v21, %v778_v26 }
 0x157   : > { %v2232_v4 = vmul.u32.u64.low %v2199_v63, %v944_v12  ;;  %v2233_v15 = vmul.u32.u64.high %v2199_v63, %v944_v12, %v2232_v4  ;;  %v1461_v48 = vadd.s32 4294967169, %v801_v45  ;;  %vm2241_vm2 = vcmp.le.f32.partialorder %v589_v5, 0.7853982 }
 0x158   : > { %v1455_v24 = vadd.s32 4294967294, %v657_v17  ;;  %v948_v54 = vsel %vm934_vm1, %v945_v6, %v947_v30  ;;  %v786_v25 = vadd.s32 3, %v782_v8  ;;  %v678_v56 = vsel %vm2241_vm2, 0, %v676_v20 }
 0x159   : > { %v2248_v41 = vmul.u32.u64.low %v2199_v63, %v948_v54  ;;  %v2249_v39 = vmul.u32.u64.high %v2199_v63, %v948_v54, %v2248_v41  ;;  %v807_v33 = vadd.s32 1, %v1461_v48  ;;  %v940_v5 = vsel %vm934_vm1, %v937_v11, %v939_v34 }
 0x15a   : > { %vm1456_vm3 = vcmp.lt.s32.totalorder %v1455_v24, 0  ;;  %v797_v61 = vand.u32 2147483647, %v2158_v19  ;;  %1638 = vcosq.f32 %v781_v23  ;;  %v959_v27 = vadd.s32 1, %v2233_v15 }
 0x15b   : > { %v660_v52 = vsel %vm1456_vm3, 0, %v1455_v24  ;;  %vm808_vm4 = vcmp.gt.s32.totalorder %v807_v33, 0  ;;  %1640 = vsinq.f32 %v781_v23  ;;  %v645_v8 = vadd.s32 %v2125_v62, %v2122_v16 }
 0x15c   : > { %v661_v51 = vsub.s32 32, %v660_v52  ;;  %v665_v29 = vsub.s32 4294967266, %v660_v52  ;;  %v682_v37 = vadd.s32 3, %v678_v56  ;;  %v956_v3 = vmul.u32 %v2199_v63, %v940_v5 }
 0x15d   : > { %vm958_vm5 = vc.u32 %v2249_v39, %v2232_v4  ;;  %v809_v7 = vsel %vm808_vm4, %v807_v33, 0  ;;  %v662_v58 = vshll.u32 %v2193_v44, %v660_v52  ;;  %v2264_v16 = vand.u32 3, %v786_v25 }
 0x15e   : > { %v663_v60 = vshrl.u32 %v645_v8, %v661_v51  ;;  %v666_v14 = vadd.s32 127, %v665_v29  ;;  %v960_v26 = vsel %vm958_vm5, %v959_v27, %v2233_v15  ;;  %v811_v1 = vand.u32 31, %v809_v7 }
 0x15f   : > { %v961_v0 = vadd.s32 %v960_v26, %v956_v3  ;;  %v2266_v63 = vand.u32 3, %v682_v37  ;;  %v804_v31 = vand.u32 8388607, %v797_v61  ;;  %v2270_v17 = vshrl.u32 %v809_v7, 5 }
 0x160   : > { %v664_v12 = vor.u32 %v663_v60, %v662_v58  ;;  %v667_v6 = vshll.u32 %v666_v14, 23  ;;  %v812_v36 = vsub.s32 32, %v811_v1  ;;  %v823_v48 = vshll.u32 %v1730_v57, %v811_v1 }
 0x161   : > { %v962_v62 = vadd.s32 536870912, %v961_v0  ;;  %v814_v25 = vshll.u32 %v1727_v49, %v811_v1  ;;  %v817_v41 = vshll.u32 %v1728_v53, %v811_v1  ;;  %v820_v33 = vshll.u32 %v1729_v55, %v811_v1 }
 0x162   : > { %v668_v45 = vor.u32 4788187, %v667_v6  ;;  %v671_v44 = vcvt.s32.f32 %v664_v12  ;;  %v815_v11 = vshrl.u32 %v1728_v53, %v812_v36  ;;  %v818_v34 = vshrl.u32 %v1729_v55, %v812_v36 }
 0x163   : > { %v2272_v20 = vshrl.u32 %v962_v62, 30  ;;  %v821_v15 = vshrl.u32 %v1730_v57, %v812_v36  ;;  %v824_v23 = vshrl.u32 %v1731_v59, %v812_v36  ;;  %v827_v27 = vshrl.u32 %v1732_v2, %v812_v36 }
 0x164   : > { %v669_v30 = vand.u32 2147483647, %v668_v45  ;;  %v1639_v24 = vpop.eup %1638  ;;  %v2286_v8 = vadd.f32 %v1868_v38, %v1832_v9  ;;  %vm789_vm6 = vcmp.eq.s32.totalorder %v2264_v16, 0  ;;  %vm792_vm7 = vcmp.eq.s32.totalorder %v2264_v16, 2 }
 0x165   : > { %v964_v54 = vshll.u32 %v2272_v20, 30  ;;  %v1641_v56 = vpop.eup %1640  ;;  %v825_v52 = vor.u32 %v824_v23, %v823_v48  ;;  %v816_v29 = vor.u32 %v815_v11, %v814_v25  ;;  %v819_v37 = vor.u32 %v818_v34, %v817_v41 }
 0x166   : > { %v672_v5 = vmul.f32 %v671_v44, %v669_v30  ;;  %v822_v3 = vor.u32 %v821_v15, %v820_v33  ;;  %v793_v7 = vxor.u32 2147483648, %v1639_v24  ;;  %v805_v60 = vor.u32 8388608, %v804_v31 }
 0x167   : > { %v2290_v51 = vsub.s32 %v961_v0, %v964_v54  ;;  %v826_v14 = vshll.u32 %v1731_v59, %v811_v1  ;;  %v790_v26 = vxor.u32 2147483648, %v1641_v56  ;;  %vm829_vm8 = vcmp.lt.s32.totalorder %v2270_v17, 1 }
 0x168   : > { %v673_v58 = vxor.u32 2147483648, %v672_v5  ;;  %vm832_vm9 = vcmp.lt.s32.totalorder %v2270_v17, 4  ;;  %vm831_vm10 = vcmp.lt.s32.totalorder %v2270_v17, 3  ;;  %v837_v31 = vsel %vm829_vm8, %v816_v29, %v819_v37 }
 0x169   : > { %v967_v12 = vsub.s32 0, %v2290_v51  ;;  %v828_v0 = vor.u32 %v827_v27, %v826_v14  ;;  %v838_v6 = vsel %vm832_vm9, %v825_v52, 920167782  ;;  %v834_v45 = vsel %vm832_vm9, %v822_v3, 2102212464 }
 0x16a   : > { %v674_v9 = vsel %vm591_vm12, %v673_v58, %v672_v5  ;;  %v813_v44 = vshrl.u32 %v1727_v49, %v812_v36  ;;  %v839_v11 = vsel %vm831_vm10, %v822_v3, %v838_v6  ;;  %v845_v34 = vshll.u32 %v805_v60, 8 }
 0x16b   : > { %v677_v1 = vsel %vm2241_vm2, %v1872_v42, %v674_v9  ;;  %v1466_v62 = vmin.u32 %v967_v12, %v2290_v51  ;;  %vm785_vm11 = vweird.f32 %v1856_v21  ;;  %vm830_vm12 = vcmp.lt.s32.totalorder %v2270_v17, 2 }
 0x16c   : > { %1642 = vcosq.f32 %v677_v1  ;;  %v841_v30 = vsel %vm829_vm8, %v819_v37, %v822_v3  ;;  %v833_v15 = vsel %vm829_vm8, %v813_v44, %v816_v29  ;;  %v835_v48 = vsel %vm831_vm10, %v819_v37, %v834_v45 }
 0x16d   : > { %1644 = vsinq.f32 %v677_v1  ;;  %v969_v50 = vclz %v1466_v62  ;;  %v840_v36 = vsel %vm830_vm12, %v837_v31, %v839_v11  ;;  %v842_v23 = vsel %vm832_vm9, %v828_v0, 1326507024 }
 0x16e   : > { %v843_v25 = vsel %vm831_vm10, %v825_v52, %v842_v23  ;;  %v2324_v41 = vmul.u32.u64.low %v845_v34, %v840_v36  ;;  %v2325_v33 = vmul.u32.u64.high %v845_v34, %v840_v36, %v2324_v41  ;;  %v791_v5 = vsel %vm789_vm6, %v1639_v24, %v790_v26 }
 0x16f   : > { %v1467_v54 = vadd.s32 4294967294, %v969_v50  ;;  %v794_v27 = vsel %vm792_vm7, %v793_v7, %v1641_v56  ;;  %v844_v29 = vsel %vm830_vm12, %v841_v30, %v843_v25  ;;  %v1112_v37 = vand.u32 2139095040, %v2286_v8  ;;  %v1662_v30 = vld [vmem:[%s2620_s2] ss:$0 sm:$0xff] }
 0x170   : > { %v836_v3 = vsel %vm830_vm12, %v833_v15, %v835_v48  ;;  %v2333_v58 = vmul.u32.u64.low %v845_v34, %v844_v29  ;;  %v2334_v60 = vmul.u32.u64.high %v845_v34, %v844_v29, %v2333_v58  ;;  %vm788_vm0 = vcmp.lt.s32.totalorder %v2264_v16, 2 }
 0x171   : > { %vm1468_vm14 = vcmp.lt.s32.totalorder %v1467_v54, 0  ;;  %v957_v17 = vadd.s32 %v2232_v4, %v2249_v39  ;;  %v1113_v14 = vshrl.u32 %v1112_v37, 23  ;;  %v795_v12 = vsel %vm788_vm0, %v791_v5, %v794_v27 }
 0x172   : > { %v972_v52 = vsel %vm1468_vm14, 0, %v1467_v54  ;;  %v855_v56 = vadd.s32 1, %v2325_v33  ;;  %vm681_vm15 = vweird.f32 %v1872_v42  ;;  %vm684_vm1 = vcmp.lt.s32.totalorder %v2266_v63, 2 }
 0x173   : > { %v973_v24 = vsub.s32 32, %v972_v52  ;;  %v977_v26 = vsub.s32 4294967266, %v972_v52  ;;  %v852_v7 = vmul.u32 %v845_v34, %v836_v3  ;;  %v1473_v9 = vadd.s32 4294967169, %v1113_v14 }
 0x174   : > { %v974_v0 = vshll.u32 %v2290_v51, %v972_v52  ;;  %vm854_vm2 = vc.u32 %v2334_v60, %v2324_v41  ;;  %v796_v39 = vsel %vm785_vm11, nan, %v795_v12  ;;  %vm688_vm3 = vcmp.eq.s32.totalorder %v2266_v63, 2 }
 0x175   : > { %v975_v6 = vshrl.u32 %v957_v17, %v973_v24  ;;  %v978_v16 = vadd.s32 127, %v977_v26  ;;  %v856_v1 = vsel %vm854_vm2, %v855_v56, %v2325_v33  ;;  %v1119_v62 = vadd.s32 1, %v1473_v9 }
 0x176   : > { %v1643_v4 = vpop.eup %1642  ;;  %v857_v34 = vadd.s32 %v856_v1, %v852_v7  ;;  %v1109_v50 = vand.u32 2147483647, %v2286_v8  ;;  %v2354_v21 = vadd.f32 %v1662_v30, %v1884_v47  ;;  %vm685_vm5 = vcmp.eq.s32.totalorder %v2266_v63, 0 }
 0x177   : > { %v1645_v45 = vpop.eup %1644  ;;  %v689_v31 = vxor.u32 2147483648, %v1643_v4  ;;  %v976_v44 = vor.u32 %v975_v6, %v974_v0  ;;  %v979_v11 = vshll.u32 %v978_v16, 23  ;;  %vm1120_vm4 = vcmp.gt.s32.totalorder %v1119_v62, 0 }
 0x178   : > { %v686_v51 = vxor.u32 2147483648, %v1645_v45  ;;  %v858_v36 = vadd.s32 536870912, %v857_v34  ;;  %v2360_v23 = vsel %vm1215_vm13, %v796_v39, %v1850_v18  ;;  %v987_v25 = vsub.s32 4, %v2272_v20 }
 0x179   : > { %v690_v15 = vsel %vm688_vm3, %v689_v31, %v1645_v45  ;;  %v980_v48 = vor.u32 4788187, %v979_v11  ;;  %v1121_v33 = vsel %vm1120_vm4, %v1119_v62, 0  ;;  %v983_v29 = vcvt.s32.f32 %v976_v44 }
 0x17a   : > { %v687_v54 = vsel %vm685_vm5, %v1643_v4, %v686_v51  ;;  %v2365_v37 = vshrl.u32 %v858_v36, 30  ;;  %v1116_v58 = vand.u32 8388607, %v1109_v50  ;;  %v1123_v17 = vand.u32 31, %v1121_v33 }
 0x17b   : > { %v691_v5 = vsel %vm684_vm1, %v687_v54, %v690_v15  ;;  %v981_v27 = vand.u32 2147483647, %v980_v48  ;;  %v1008_v18 = vand.u32 2139095040, %v2354_v21  ;;  %vm903_vm6 = vcmp.lt.s32.totalorder %v2049_v40, 0 }
 0x17c   : > { %v692_v3 = vsel %vm681_vm15, nan, %v691_v5  ;;  %v860_v14 = vshll.u32 %v2365_v37, 30  ;;  %v1124_v42 = vsub.s32 32, %v1123_v17  ;;  %vm2383_vm7 = vcmp.le.f32.partialorder %v901_v10, 0.7853982 }
 0x17d   : > { %v2375_v52 = vsel %vm1215_vm13, %v692_v3, %v1858_v22  ;;  %v984_v63 = vmul.f32 %v983_v29, %v981_v27  ;;  %v2388_v56 = vsel %vm903_vm6, %v987_v25, %v2272_v20  ;;  %v1117_v7 = vor.u32 8388608, %v1116_v58 }
 0x17e   : > { %v1225_v12 = vpack.c.bf16 %v2360_v23, %v2375_v52  ;;  %v2390_v22 = vsub.s32 %v857_v34, %v860_v14  ;;  %v1127_v9 = vshrl.u32 %v1728_v53, %v1124_v42  ;;  %v1130_v0 = vshrl.u32 %v1729_v55, %v1124_v42 }
 0x17f   : > { %v985_v26 = vxor.u32 2147483648, %v984_v63  ;;  %v1009_v6 = vshrl.u32 %v1008_v18, 23  ;;  %v1126_v4 = vshll.u32 %v1727_v49, %v1123_v17  ;;  %v1129_v10 = vshll.u32 %v1728_v53, %v1123_v17 }
 0x180   : > { %v863_v16 = vsub.s32 0, %v2390_v22  ;;  %v1133_v39 = vshrl.u32 %v1730_v57, %v1124_v42  ;;  %v990_v20 = vsel %vm2383_vm7, 0, %v2388_v56  ;;  %v1122_v62 = vshrl.u32 %v1121_v33, 5 }
 0x181   : > { %v986_v1 = vsel %vm903_vm6, %v985_v26, %v984_v63  ;;  %v1132_v45 = vshll.u32 %v1729_v55, %v1123_v17  ;;  %v1128_v44 = vor.u32 %v1127_v9, %v1126_v4  ;;  %v1131_v11 = vor.u32 %v1130_v0, %v1129_v10 }
 0x182   : > { %v1462_v31 = vmin.u32 %v863_v16, %v2390_v22  ;;  %v1135_v34 = vshll.u32 %v1730_v57, %v1123_v17  ;;  %v1136_v30 = vshrl.u32 %v1731_v59, %v1124_v42  ;;  %v1138_v15 = vshll.u32 %v1731_v59, %v1123_v17 }
 0x183   : > { %v1134_v51 = vor.u32 %v1133_v39, %v1132_v45  ;;  %v1139_v48 = vshrl.u32 %v1732_v2, %v1124_v42  ;;  %v853_v36 = vadd.s32 %v2324_v41, %v2334_v60  ;;  %v1157_v25 = vshll.u32 %v1117_v7, 8 }
 0x184   : > { %v865_v54 = vclz %v1462_v31  ;;  %v1469_v33 = vadd.s32 4294967169, %v1009_v6  ;;  %v989_v5 = vsel %vm2383_vm7, %v2049_v40, %v986_v1  ;;  %v1125_v27 = vshrl.u32 %v1727_v49, %v1124_v42 }
 0x185   : > { %v1137_v29 = vor.u32 %v1136_v30, %v1135_v34  ;;  %v1140_v3 = vor.u32 %v1139_v48, %v1138_v15  ;;  %vm1141_vm8 = vcmp.lt.s32.totalorder %v1122_v62, 1  ;;  %vm1143_vm9 = vcmp.lt.s32.totalorder %v1122_v62, 3 }
 0x186   : > { %v1463_v58 = vadd.s32 4294967294, %v865_v54  ;;  %vm1144_vm10 = vcmp.lt.s32.totalorder %v1122_v62, 4  ;;  %v1149_v18 = vsel %vm1141_vm8, %v1128_v44, %v1131_v11  ;;  %v1153_v14 = vsel %vm1141_vm8, %v1131_v11, %v1134_v51 }
 0x187   : > { %v1146_v17 = vsel %vm1144_vm10, %v1134_v51, 2102212464  ;;  %v1150_v63 = vsel %vm1144_vm10, %v1137_v29, 920167782  ;;  %vm1142_vm12 = vcmp.lt.s32.totalorder %v1122_v62, 2  ;;  %v1145_v24 = vsel %vm1141_vm8, %v1125_v27, %v1128_v44 }
 0x188   : > { %vm1464_vm11 = vcmp.lt.s32.totalorder %v1463_v58, 0  ;;  %v1151_v41 = vsel %vm1143_vm9, %v1134_v51, %v1150_v63  ;;  %v1154_v60 = vsel %vm1144_vm10, %v1140_v3, 1326507024  ;;  %v1147_v0 = vsel %vm1143_vm9, %v1131_v11, %v1146_v17 }
 0x189   : > { %v868_v26 = vsel %vm1464_vm11, 0, %v1463_v58  ;;  %v1152_v56 = vsel %vm1142_vm12, %v1149_v18, %v1151_v41  ;;  %v1155_v42 = vsel %vm1143_vm9, %v1137_v29, %v1154_v60  ;;  %v1015_v44 = vadd.s32 1, %v1469_v33 }
 0x18a   : > { %v869_v7 = vsub.s32 32, %v868_v26  ;;  %v873_v9 = vsub.s32 4294967266, %v868_v26  ;;  %v1156_v6 = vsel %vm1142_vm12, %v1153_v14, %v1155_v42  ;;  %v870_v1 = vshll.u32 %v2390_v22, %v868_v26 }
 0x18b   : > { %v2418_v16 = vmul.u32.u64.low %v1157_v25, %v1156_v6  ;;  %v2419_v4 = vmul.u32.u64.high %v1157_v25, %v1156_v6, %v2418_v16  ;;  %v2421_v10 = vmul.u32.u64.low %v1157_v25, %v1152_v56  ;;  %v2422_v39 = vmul.u32.u64.high %v1157_v25, %v1152_v56, %v2421_v10 }
 0x18c   : > { %v871_v45 = vshrl.u32 %v853_v36, %v869_v7  ;;  %v874_v31 = vadd.s32 127, %v873_v9  ;;  %1646 = vcosq.f32 %v989_v5  ;;  %v883_v34 = vsub.s32 4, %v2365_v37 }
 0x18d   : > { %v1148_v51 = vsel %vm1142_vm12, %v1145_v24, %v1147_v0  ;;  %vm1267_vm14 = vcmask 523264   ;;  %1648 = vsinq.f32 %v989_v5  ;;  %vm1016_vm0 = vcmp.gt.s32.totalorder %v1015_v44, 0 }
 0x18e   : > { %v872_v11 = vor.u32 %v871_v45, %v870_v1  ;;  %v875_v30 = vshll.u32 %v874_v31, 23  ;;  %1531 = vmatprep.mubr.msk.bf16.mxu0 %vm1267_vm14, %v1224_v13  ;;  %v994_v15 = vadd.s32 3, %v990_v20  ;;  %vm1166_vm15 = vc.u32 %v2419_v4, %v2421_v10 }
 0x18f   : > { %v1167_v22 = vadd.s32 1, %v2422_v39  ;;  %v1005_v48 = vand.u32 2147483647, %v2354_v21  ;;  %1532 = vmatmul.mubr.msk.bf16.vlgmr.msra.gmra.mrb[8].mxu0 %vm1267_vm14, %v1225_v12  ;;  %vm799_vm1 = vcmp.lt.s32.totalorder %v2158_v19, 0  ;;  %v1164_v36 = vmul.u32 %v1157_v25, %v1148_v51 }
 0x190   : > { %v876_v62 = vor.u32 4788187, %v875_v30  ;;  %v1017_v32 = vsel %vm1016_vm0, %v1015_v44, 0  ;;  %v884_v43 = vsel %vm799_vm1, %v883_v34, %v2365_v37  ;;  %v879_v33 = vcvt.s32.f32 %v872_v11 }
 0x191   : > { %v1168_v13 = vsel %vm1166_vm15, %v1167_v22, %v2422_v39  ;;  %v1019_v20 = vand.u32 31, %v1017_v32  ;;  %v2445_v27 = vand.u32 3, %v994_v15  ;;  %vm2449_vm2 = vcmp.le.f32.partialorder %v797_v61, 0.7853982 }
 0x192   : > { %v877_v54 = vand.u32 2147483647, %v876_v62  ;;  %v1169_v5 = vadd.s32 %v1168_v13, %v1164_v36  ;;  %v1012_v52 = vand.u32 8388607, %v1005_v48  ;;  %v886_v37 = vsel %vm2449_vm2, 0, %v884_v43 }
 0x193   : > { %v1020_v12 = vsub.s32 32, %v1019_v20  ;;  %v2457_v3 = vshrl.u32 %v1017_v32, 5  ;;  %v1022_v58 = vshll.u32 %v1727_v49, %v1019_v20  ;;  %v1025_v61 = vshll.u32 %v1728_v53, %v1019_v20 }
 0x194   : > { %v880_v25 = vmul.f32 %v879_v33, %v877_v54  ;;  %v1170_v29 = vadd.s32 536870912, %v1169_v5  ;;  %vm997_vm3 = vcmp.eq.s32.totalorder %v2445_v27, 0  ;;  %vm1000_vm4 = vcmp.eq.s32.totalorder %v2445_v27, 2 }
 0x195   : > { %v1023_v17 = vshrl.u32 %v1728_v53, %v1020_v12  ;;  %v1026_v18 = vshrl.u32 %v1729_v55, %v1020_v12  ;;  %v1029_v41 = vshrl.u32 %v1730_v57, %v1020_v12  ;;  %v1032_v60 = vshrl.u32 %v1731_v59, %v1020_v12 }
 0x196   : > { %v881_v63 = vxor.u32 2147483648, %v880_v25  ;;  %v2463_v14 = vshrl.u32 %v1170_v29, 30  ;;  %v1647_v26 = vpop.eup %1646  ;;  %v1028_v24 = vshll.u32 %v1729_v55, %v1019_v20  ;;  %v1031_v56 = vshll.u32 %v1730_v57, %v1019_v20 }
 0x197   : > { %v1034_v53 = vshll.u32 %v1731_v59, %v1019_v20  ;;  %v1035_v42 = vshrl.u32 %v1732_v2, %v1020_v12  ;;  %v1649_v7 = vpop.eup %1648  ;;  %v1024_v6 = vor.u32 %v1023_v17, %v1022_v58  ;;  %v1027_v16 = vor.u32 %v1026_v18, %v1025_v61 }
 0x198   : > { %v882_v9 = vsel %vm799_vm1, %v881_v63, %v880_v25  ;;  %v1172_v0 = vshll.u32 %v2463_v14, 30  ;;  %v1013_v1 = vor.u32 8388608, %v1012_v52  ;;  %v1033_v55 = vor.u32 %v1032_v60, %v1031_v56 }
 0x199   : > { %v885_v39 = vsel %vm2449_vm2, %v2158_v19, %v882_v9  ;;  %v1036_v45 = vor.u32 %v1035_v42, %v1034_v53  ;;  %v890_v57 = vadd.s32 3, %v886_v37  ;;  %v1030_v2 = vor.u32 %v1029_v41, %v1028_v24 }
 0x19a   : > { %1650 = vcosq.f32 %v885_v39  ;;  %v2479_v59 = vsub.s32 %v1169_v5, %v1172_v0  ;;  %v998_v31 = vxor.u32 2147483648, %v1649_v7  ;;  %v1001_v44 = vxor.u32 2147483648, %v1647_v26 }
 0x19b   : > { %1652 = vsinq.f32 %v885_v39  ;;  %vm1037_vm5 = vcmp.lt.s32.totalorder %v2457_v3, 1  ;;  %v1021_v51 = vshrl.u32 %v1727_v49, %v1020_v12  ;;  %vm1040_vm6 = vcmp.lt.s32.totalorder %v2457_v3, 4 }
 0x19c   : > { %v1175_v34 = vsub.s32 0, %v2479_v59  ;;  %v1045_v11 = vsel %vm1037_vm5, %v1024_v6, %v1027_v16  ;;  %vm1038_vm7 = vcmp.lt.s32.totalorder %v2457_v3, 2  ;;  %vm1039_vm8 = vcmp.lt.s32.totalorder %v2457_v3, 3 }
 0x19d   : > { %v1046_v30 = vsel %vm1040_vm6, %v1033_v55, 920167782  ;;  %v1050_v15 = vsel %vm1040_vm6, %v1036_v45, 1326507024  ;;  %v1042_v62 = vsel %vm1040_vm6, %v1030_v2, 2102212464  ;;  %v1049_v32 = vsel %vm1037_vm5, %v1027_v16, %v1030_v2 }
 0x19e   : > { %v1474_v22 = vmin.u32 %v1175_v34, %v2479_v59  ;;  %v1047_v36 = vsel %vm1039_vm8, %v1030_v2, %v1046_v30  ;;  %v891_v43 = vand.u32 3, %v890_v57  ;;  %v1051_v13 = vsel %vm1039_vm8, %v1033_v55, %v1050_v15 }
 0x19f   : > { %v1048_v49 = vsel %vm1038_vm7, %v1045_v11, %v1047_v36  ;;  %v1053_v20 = vshll.u32 %v1013_v1, 8  ;;  %v999_v54 = vsel %vm997_vm3, %v1647_v26, %v998_v31  ;;  %v1002_v33 = vsel %vm1000_vm4, %v1001_v44, %v1649_v7 }
 0x1a0   : > { %v1177_v5 = vclz %v1474_v22  ;;  %v1041_v23 = vsel %vm1037_vm5, %v1021_v51, %v1024_v6  ;;  %v1043_v52 = vsel %vm1039_vm8, %v1027_v16, %v1042_v62  ;;  %v1052_v12 = vsel %vm1038_vm7, %v1049_v32, %v1051_v13 }
 0x1a1   : > { %v2502_v25 = vmul.u32.u64.low %v1053_v20, %v1048_v49  ;;  %v2503_v37 = vmul.u32.u64.high %v1053_v20, %v1048_v49, %v2502_v25  ;;  %vm996_vm9 = vcmp.lt.s32.totalorder %v2445_v27, 2  ;;  %vm993_vm10 = vweird.f32 %v2049_v40 }
 0x1a2   : > { %v1475_v29 = vadd.s32 4294967294, %v1177_v5  ;;  %v2506_v58 = vmul.u32.u64.low %v1053_v20, %v1052_v12  ;;  %v2507_v17 = vmul.u32.u64.high %v1053_v20, %v1052_v12, %v2506_v58  ;;  %v1003_v61 = vsel %vm996_vm9, %v999_v54, %v1002_v33 }
 0x1a3   : > { %vm889_vm11 = vweird.f32 %v2158_v19  ;;  %vm893_vm12 = vcmp.eq.s32.totalorder %v891_v43, 0  ;;  %v1044_v63 = vsel %vm1038_vm7, %v1041_v23, %v1043_v52  ;;  %vm896_vm15 = vcmp.eq.s32.totalorder %v891_v43, 2 }
 0x1a4   : > { %v1651_v18 = vpop.eup %1650  ;;  %vm1476_vm0 = vcmp.lt.s32.totalorder %v1475_v29, 0  ;;  %v1063_v27 = vadd.s32 1, %v2503_v37  ;;  %v1004_v24 = vsel %vm993_vm10, nan, %v1003_v61  ;;  %v1165_v7 = vadd.s32 %v2421_v10, %v2419_v4 }
 0x1a5   : > { %v1653_v41 = vpop.eup %1652  ;;  %v897_v60 = vxor.u32 2147483648, %v1651_v18  ;;  %v1180_v26 = vsel %vm1476_vm0, 0, %v1475_v29  ;;  %v1060_v9 = vmul.u32 %v1053_v20, %v1044_v63  ;;  %vm1062_vm1 = vc.u32 %v2507_v17, %v2502_v25 }
 0x1a6   : > { %v894_v56 = vxor.u32 2147483648, %v1653_v41  ;;  %v1181_v53 = vsub.s32 32, %v1180_v26  ;;  %v1185_v42 = vsub.s32 4294967266, %v1180_v26  ;;  %vm892_vm2 = vcmp.lt.s32.totalorder %v891_v43, 2 }
 0x1a7   : > { %v898_v40 = vsel %vm896_vm15, %v897_v60, %v1653_v41  ;;  %v1064_v6 = vsel %vm1062_vm1, %v1063_v27, %v2503_v37  ;;  %v1221_v16 = vsel %vm1215_vm13, %v1004_v24, %v1863_v28  ;;  %v1182_v57 = vshll.u32 %v2479_v59, %v1180_v26 }
 0x1a8   : > { %v895_v3 = vsel %vm893_vm12, %v1651_v18, %v894_v56  ;;  %v1186_v0 = vadd.s32 127, %v1185_v42  ;;  %v1183_v1 = vshrl.u32 %v1165_v7, %v1181_v53  ;;  %v1065_v55 = vadd.s32 %v1064_v6, %v1060_v9 }
 0x1a9   : > { %v899_v39 = vsel %vm892_vm2, %v895_v3, %v898_v40  ;;  %vm1111_vm3 = vcmp.lt.s32.totalorder %v2286_v8, 0  ;;  %vm2534_vm5 = vcmp.le.f32.partialorder %v1109_v50, 0.7853982  ;;  %v1061_v13 = vadd.s32 %v2502_v25, %v2507_v17 }
 0x1aa   : > { %v900_v45 = vsel %vm889_vm11, nan, %v899_v39  ;;  %v1187_v4 = vshll.u32 %v1186_v0, 23  ;;  %v1066_v2 = vadd.s32 536870912, %v1065_v55  ;;  %v1184_v34 = vor.u32 %v1183_v1, %v1182_v57 }
 0x1ab   : > { %v1220_v10 = vsel %vm1215_vm13, %v900_v45, %v1866_v35  ;;  %v1195_v12 = vsub.s32 4, %v2463_v14  ;;  %vm1007_vm6 = vcmp.lt.s32.totalorder %v2354_v21, 0  ;;  %vm1006_vm7 = vcmp.le.f32.partialorder %v1005_v48, 0.7853982 }
 0x1ac   : > { %v1188_v31 = vor.u32 4788187, %v1187_v4  ;;  %v1226_v44 = vpack.c.bf16 %v1221_v16, %v1220_v10  ;;  %v1067_v51 = vshrl.u32 %v1066_v2, 30  ;;  %v1191_v30 = vcvt.s32.f32 %v1184_v34  ;;  %v1477_v34 = vld [vmem:[%s2622_s4] ss:$0 sm:$0xff] }
 0x1ad   : > { %v1196_v25 = vsel %vm1111_vm3, %v1195_v12, %v2463_v14  ;;  %vm1201_vm11 = vweird.f32 %v2286_v8  ;;  %vm1097_vm1 = vweird.f32 %v2354_v21 }
 0x1ae   : > { %1535 = vmatprep.mubr.msk.bf16.mxu1 %vm1267_vm14, %v1226_v44  ;;  %v1189_v28 = vand.u32 2147483647, %v1188_v31  ;;  %v1068_v11 = vshll.u32 %v1067_v51, 30  ;;  %v1198_v61 = vsel %vm2534_vm5, 0, %v1196_v25  ;;  %v1091_v63 = vsub.s32 4, %v1067_v51 }
 0x1af   : > { %v1202_v60 = vadd.s32 3, %v1198_v61 }
 0x1b0   : > { %v1069_v15 = vsub.s32 %v1065_v55, %v1068_v11  ;;  %v1192_v19 = vmul.f32 %v1191_v30, %v1189_v28  ;;  %v1092_v24 = vsel %vm1007_vm6, %v1091_v63, %v1067_v51 }
 0x1b1   : > { %v1203_v53 = vand.u32 3, %v1202_v60  ;;  %v1094_v42 = vsel %vm1006_vm7, 0, %v1092_v24 }
 0x1b2   : > { %v1071_v22 = vsub.s32 0, %v1069_v15  ;;  %v1193_v36 = vxor.u32 2147483648, %v1192_v19  ;;  %v1098_v9 = vadd.s32 3, %v1094_v42 }
 0x1b3   : > { %vm1205_vm8 = vcmp.eq.s32.totalorder %v1203_v53, 0  ;;  %vm1208_vm9 = vcmp.eq.s32.totalorder %v1203_v53, 2  ;;  %vm1204_vm10 = vcmp.lt.s32.totalorder %v1203_v53, 2 }
 0x1b4   : > { %v1470_v62 = vmin.u32 %v1071_v22, %v1069_v15  ;;  %v1194_v35 = vsel %vm1111_vm3, %v1193_v36, %v1192_v19  ;;  %v1099_v6 = vand.u32 3, %v1098_v9 }
 0x1b5   : > { %v1197_v33 = vsel %vm2534_vm5, %v2286_v8, %v1194_v35 }
 0x1b6   : > { %v1073_v32 = vclz %v1470_v62  ;;  %1654 = vcosq.f32 %v1197_v33  ;;  %vm1104_vm12 = vcmp.eq.s32.totalorder %v1099_v6, 2  ;;  %vm1101_vm0 = vcmp.eq.s32.totalorder %v1099_v6, 0 }
 0x1b7   : > { %1656 = vsinq.f32 %v1197_v33  ;;  %vm1100_vm15 = vcmp.lt.s32.totalorder %v1099_v6, 2 }
 0x1b8   : > { %v1471_v43 = vadd.s32 4294967294, %v1073_v32 }
 0x1ba   : > { %vm1472_vm4 = vcmp.lt.s32.totalorder %v1471_v43, 0 }
 0x1bb   : > { %v1076_v59 = vsel %vm1472_vm4, 0, %v1471_v43 }
 0x1bc   : > { %v1077_v20 = vsub.s32 32, %v1076_v59  ;;  %v1081_v54 = vsub.s32 4294967266, %v1076_v59  ;;  %v1078_v5 = vshll.u32 %v1069_v15, %v1076_v59 }
 0x1be   : > { %v1079_v23 = vshrl.u32 %v1061_v13, %v1077_v20  ;;  %v1082_v52 = vadd.s32 127, %v1081_v54 }
 0x1c0   : > { %v1080_v37 = vor.u32 %v1079_v23, %v1078_v5  ;;  %v1083_v29 = vshll.u32 %v1082_v52, 23  ;;  %v1655_v26 = vpop.eup %1654 }
 0x1c1   : > { %v1657_v56 = vpop.eup %1656  ;;  %v1209_v7 = vxor.u32 2147483648, %v1655_v26 }
 0x1c2   : > { %v1084_v50 = vor.u32 4788187, %v1083_v29  ;;  %v1087_v17 = vcvt.s32.f32 %v1080_v37  ;;  %v1206_v40 = vxor.u32 2147483648, %v1657_v56 }
 0x1c3   : > { %v1210_v0 = vsel %vm1208_vm9, %v1209_v7, %v1657_v56 }
 0x1c4   : > { %v1085_v58 = vand.u32 2147483647, %v1084_v50  ;;  %v1207_v3 = vsel %vm1205_vm8, %v1655_v26, %v1206_v40 }
 0x1c5   : > { %v1211_v16 = vsel %vm1204_vm10, %v1207_v3, %v1210_v0 }
 0x1c6   : > { %v1088_v18 = vmul.f32 %v1087_v17, %v1085_v58  ;;  %v1212_v55 = vsel %vm1201_vm11, nan, %v1211_v16 }
 0x1c7   : > { %v1223_v57 = vsel %vm1215_vm13, %v1212_v55, %v1868_v38 }
 0x1c8   : > { %v1089_v41 = vxor.u32 2147483648, %v1088_v18 }
 0x1ca   : > { %v1090_v27 = vsel %vm1007_vm6, %v1089_v41, %v1088_v18 }
 0x1cb   : > { %v1093_v14 = vsel %vm1006_vm7, %v2354_v21, %v1090_v27 }
 0x1cc   : > { %1658 = vcosq.f32 %v1093_v14 }
 0x1cd   : > { %1660 = vsinq.f32 %v1093_v14 }
 0x1d6   : > { %v1659_v48 = vpop.eup %1658 }
 0x1d7   : > { %v1661_v39 = vpop.eup %1660  ;;  %v1105_v1 = vxor.u32 2147483648, %v1659_v48 }
 0x1d8   : > { %v1102_v45 = vxor.u32 2147483648, %v1661_v39 }
 0x1d9   : > { %v1106_v4 = vsel %vm1104_vm12, %v1105_v1, %v1661_v39 }
 0x1da   : > { %v1103_v10 = vsel %vm1101_vm0, %v1659_v48, %v1102_v45 }
 0x1db   : > { %v1107_v2 = vsel %vm1100_vm15, %v1103_v10, %v1106_v4 }
 0x1dc   : > { %v1108_v31 = vsel %vm1097_vm1, nan, %v1107_v2 }
 0x1dd   : > { %v1222_v8 = vsel %vm1215_vm13, %v1108_v31, %v1884_v47 }
 0x1de   : > { %v1227_v44 = vpack.c.bf16 %v1223_v57, %v1222_v8 }
 0x1e0   : > { %1536 = vmatmul.mubr.msk.bf16.vlgmr.msra.gmra.mrb[0].mxu1 %vm1267_vm14, %v1227_v44 }
 0x262   : > { %v1533_v38 = vpop.f32.mrb[8].mxu0 }
 0x263   : > { %v1323_v51 = vadd.f32 %v1533_v38, %v1477_v34  ;;  %v1314_v21 = vpop.f32.mrb[9].mxu0 }
 0x264   : > { %v1315_v28 = vadd.f32 %v1477_v34, %v1314_v21  ;;  %v1534_v11 = vpop.f32.mrb[10].mxu0 }
 0x265   : > { %1347 = vst [vmem:[%s218_s12 + $0x10] sm:$0xff] %v1323_v51  ;;  %v1326_v46 = vadd.f32 %v1534_v11, %v1477_v34  ;;  %v1317_v47 = vpop.f32.mrb[11].mxu0 }
 0x266   : > { %1345 = vst [vmem:[%s218_s12] sm:$0xff] %v1315_v28  ;;  %v1318_v30 = vadd.f32 %v1477_v34, %v1317_v47 }
 0x267   : > { %1348 = vst [vmem:[%s218_s12 + $0x18] sm:$0xff] %v1326_v46 }
 0x268   : > { %1346 = vst [vmem:[%s218_s12 + $0x8] sm:$0xff] %v1318_v30 }
 0x2b3   : > { %v1537_v15 = vpop.f32.mrb[0].mxu1 }
 0x2b4   : > { %v1339_v19 = vadd.f32 %v1537_v15, %v1477_v34  ;;  %v1330_v22 = vpop.f32.mrb[1].mxu1 }
 0x2b5   : > { %v1331_v62 = vadd.f32 %v1477_v34, %v1330_v22  ;;  %v1538_v36 = vpop.f32.mrb[2].mxu1 }
 0x2b6   : > { %1351 = vst [vmem:[%s218_s12 + $0x30] sm:$0xff] %v1339_v19  ;;  %v1342_v32 = vadd.f32 %v1538_v36, %v1477_v34  ;;  %v1333_v43 = vpop.f32.mrb[3].mxu1 }
 0x2b7   : > { %1349 = vst [vmem:[%s218_s12 + $0x20] sm:$0xff] %v1331_v62  ;;  %v1334_v35 = vadd.f32 %v1477_v34, %v1333_v43 }
 0x2b8   : > { %1352 = vst [vmem:[%s218_s12 + $0x38] sm:$0xff] %v1342_v32 }
 0x2b9   : > { %1350 = vst [vmem:[%s218_s12 + $0x28] sm:$0xff] %v1334_v35 }
 0x2ba   : > { %1676 = shalt.err (!%p1673_p3)
}
 0x2bb   : > { %s1677_s6 = scalar_lea.hbm %s2571_s17, 1024  ;;  %s1681_s9 = scalar_lea.hbm %s2623_s5, 2048 }
 0x2bc   : > { %p1678_p4 = scmp.ne.s32.totalorder %s2571_s17, %s1677_s6  ;;  %p1682_p9 = scmp.lt.u32.totalorder %s2571_s17, %s2623_s5 }
 0x2bd   : > { %p1683_p10 = scmp.lt.u32.totalorder %s1681_s9, %s1677_s6  ;;  %p1685_p12 = scmp.lt.u32.totalorder %s1677_s6, %s2571_s17 }
 0x2be   : > { %p1679_p7 = pnand %p1678_p4, %p1804_p5 }
 0x2bf   : > { %p1684_p11 = por %p1683_p10, %p1682_p9 }
 0x2c0   : > { %p1680_p8 = pneg %p1679_p7 }
 0x2c1   : > { %p1686_p13 = por %p1685_p12, %p1684_p11 }
 0x2c3   : > { %p1687_p0 = pnand %p1686_p13, %p1680_p8 }
 0x2c5   : > { %1690 = shalt.err (!%p1687_p0)
}
 0x2c6   : > { %s1734_s12 = smov 128   ;;  %s1735_s13 = smov 8  }
 0x2c7   : > { %1579 = dma.vmem_to_hbm [thread:$0]  (%p1804_p5), %s2573_s14, 1024, %s2571_s17, %s2577_s22, %s1734_s12, %s1734_s12, %s1735_s13  }
 0x2c8 PF: > { %p1585_p1 = scmp.ge.s32.totalorder %s1725_s21, 2  ;;  %s1382_s15 = sand.u32 1, %s1713_s18  }
 0x2c9   : > { %s1383_s16 = scalar_lea.sflag [#allocation3], %s1382_s15 }
 0x2ca   : > { %p1582_p2 = pnand %p1585_p1, %p1808_p6 }
 0x2cc   : > { %1708 = dma.done.wait (!%p1582_p2), %s1383_s16, 1024  }
 0x2cd   : > { %1710 = vsyncadd (!%p1582_p2), %s1383_s16, 4294966272  ;;  %p15_p3 = scmp.ge.s32.totalorder %s1791_s24, 4   ;;  %s2640_s18 = smov %s1717_s19 }
 0x2ce   : > { %s2641_s19 = smov %s1721_s20  ;;  %s2642_s20 = smov %s1802_s27 }
 0x2cf   : > { %s2643_s21 = smov %s1791_s24  ;;  %17 = sbr.rel (!%p15_p3) target bundleno = 3 (0x3), region = 75 }
 0x2d6   :  { %1388 = vsyncpa [#allocation3], 1 }
 0x2d7   :  { %1390 = vsyncpa [#allocation3 + $0x1], 1 }

</bundles_post_ra>
